<compile_context>
chip_gen: v7x
topology: tpu7x:2x2x1
jax: 0.10.0
libtpu: 0.0.40
codegen_flags: <defaults>
</compile_context>

<pallas_src>
import functools

import jax
import jax.numpy as jnp
from jax import lax
from jax.experimental import pallas as pl
from jax.experimental.pallas import tpu as pltpu


# ----------------------------------------------------------------------------
# Kernel 1: 3x3 conv (padding=1, stride=1) as ONE folded bf16 matmul per batch
#           element + per-block partial BatchNorm statistics.
# ----------------------------------------------------------------------------
def _conv_stats_kernel(x_ref, w_ref, b_ref, y_ref, sum_ref, sq_ref):
    # x_ref  : (1, H+2, W+2, Cin)  bf16 padded input tile (one batch element)
    # w_ref  : (9*Cin, Cout)       bf16 folded conv weights (tap-major rows)
    # b_ref  : (1, Cout)           f32 conv bias
    # y_ref  : (1, H, W, Cout)     bf16 conv output for this batch element
    # sum_ref/sq_ref : (1, 1, Cout) f32 per-block partial sum / sum-of-squares
    H, W, Cout = y_ref.shape[1], y_ref.shape[2], y_ref.shape[3]
    Cin = x_ref.shape[3]

    # im2col: gather the 9 taps along the channel (lane) axis -> (H*W, 9*Cin),
    # then a single K = 9*Cin MXU matmul (bf16 operands, f32 accumulate).
    taps = [x_ref[0, dy:dy + H, dx:dx + W, :]
            for dy in range(3) for dx in range(3)]
    patch = jnp.concatenate(taps, axis=-1).reshape(H * W, 9 * Cin)

    acc = jnp.dot(patch, w_ref[...], preferred_element_type=jnp.float32)
    acc = acc + b_ref[...]                                   # f32 bias add

    y_ref[...] = acc.reshape(1, H, W, Cout).astype(y_ref.dtype)

    # Per-block partial batch statistics (summed over N in the wrapper).
    # Computed from the f32 accumulator, so storing y in bf16 does not affect
    # the BatchNorm mean / variance.
    psum = acc.sum(axis=0, keepdims=True)                    # (1, Cout) f32
    psq = (acc * acc).sum(axis=0, keepdims=True)             # (1, Cout) f32
    sum_ref[...] = psum[None, :, :]
    sq_ref[...] = psq[None, :, :]


# ----------------------------------------------------------------------------
# Kernel 2: BatchNorm (folded to per-channel affine) + ReLU on a lane-dense
#           2D view (bf16 in, f32 out).
# ----------------------------------------------------------------------------
def _bn_relu_kernel(y_ref, scale_ref, shift_ref, o_ref):
    # y_ref : (block_rows, L) bf16, scale/shift : (1, L) f32, o_ref f32
    y = y_ref[...].astype(jnp.float32)
    o_ref[...] = jnp.maximum(y * scale_ref[...] + shift_ref[...], 0.0).astype(
        o_ref.dtype)


def _pick_block_rows(rows: int, target: int = 2048) -> int:
    """Largest row-tile <= target that divides `rows` and is a multiple of 8."""
    if rows <= target:
        return rows                      # full extent is always a legal block
    for cand in range(target, 7, -1):
        if rows % cand == 0 and cand % 8 == 0:
            return cand
    return rows


# ----------------------------------------------------------------------------
# Wrapper (NCHW in / NCHW out, matching PyTorch)
# ----------------------------------------------------------------------------
@functools.partial(jax.jit, static_argnames=("eps",))
def convolutional_block(x_nchw, w_oihw, bias, gamma, beta, eps=1e-5):
    N, Cin, H, W = x_nchw.shape
    Cout = w_oihw.shape[0]

    # --- glue: NCHW -> NHWC (channels on lanes), bf16, spatial pad=1 ---
    x = jnp.transpose(x_nchw, (0, 2, 3, 1)).astype(jnp.bfloat16)
    x_pad = jnp.pad(x, ((0, 0), (1, 1), (1, 1), (0, 0)))
    # (Cout, Cin, KH, KW) -> (KH, KW, Cin, Cout) -> (9*Cin, Cout), tap-major rows
    w = jnp.transpose(w_oihw, (2, 3, 1, 0)).reshape(9 * Cin, Cout)
    w = w.astype(jnp.bfloat16)
    b2 = bias.reshape(1, Cout).astype(jnp.float32)

    # --- Pallas pass 1: conv + per-block partial batch stats (parallel grid) ---
    y, psum, psq = pl.pallas_call(
        _conv_stats_kernel,
        out_shape=(
            jax.ShapeDtypeStruct((N, H, W, Cout), jnp.bfloat16),
            jax.ShapeDtypeStruct((N, 1, Cout), jnp.float32),
            jax.ShapeDtypeStruct((N, 1, Cout), jnp.float32),
        ),
        grid=(N,),
        in_specs=[
            pl.BlockSpec((1, H + 2, W + 2, Cin), lambda n: (n, 0, 0, 0)),
            pl.BlockSpec((9 * Cin, Cout), lambda n: (0, 0)),
            pl.BlockSpec((1, Cout), lambda n: (0, 0)),
        ],
        out_specs=(
            pl.BlockSpec((1, H, W, Cout), lambda n: (n, 0, 0, 0)),
            pl.BlockSpec((1, 1, Cout), lambda n: (n, 0, 0)),
            pl.BlockSpec((1, 1, Cout), lambda n: (n, 0, 0)),
        ),
        compiler_params=pltpu.CompilerParams(
            dimension_semantics=("parallel",),
        ),
    )(x_pad, w, b2)

    # --- glue: finish stats reduction, fold BN into per-channel scale/shift ---
    count = float(N * H * W)
    ch_sum = psum.reshape(N, Cout).sum(axis=0)
    ch_sq = psq.reshape(N, Cout).sum(axis=0)
    mean = ch_sum / count
    var = ch_sq / count - mean * mean          # biased variance (PyTorch train)
    scale = (gamma / jnp.sqrt(var + eps)).astype(jnp.float32)
    shift = (beta - mean * scale).astype(jnp.float32)

    # --- Pallas pass 2: lane-dense BN + ReLU ---
    total = N * H * W * Cout
    if Cout % 128 == 0:
        lane = Cout
    elif 128 % Cout == 0 and total % 128 == 0:
        lane = 128          # pack 128 // Cout pixels per row -> unmasked stores
    else:
        lane = Cout
    rep = lane // Cout
    rows = total // lane

    y2 = y.reshape(rows, lane)                   # same linear order: free reshape
    scale_l = jnp.tile(scale, rep).reshape(1, lane)
    shift_l = jnp.tile(shift, rep).reshape(1, lane)

    block_rows = _pick_block_rows(rows)
    out2 = pl.pallas_call(
        _bn_relu_kernel,
        out_shape=jax.ShapeDtypeStruct((rows, lane), jnp.float32),
        grid=(rows // block_rows,),
        in_specs=[
            pl.BlockSpec((block_rows, lane), lambda i: (i, 0)),
            pl.BlockSpec((1, lane), lambda i: (0, 0)),
            pl.BlockSpec((1, lane), lambda i: (0, 0)),
        ],
        out_specs=pl.BlockSpec((block_rows, lane), lambda i: (i, 0)),
        compiler_params=pltpu.CompilerParams(
            dimension_semantics=("parallel",),
        ),
    )(y2, scale_l, shift_l)

    out_nhwc = out2.reshape(N, H, W, Cout)
    return jnp.transpose(out_nhwc, (0, 3, 1, 2))     # back to NCHW


# ----------------------------------------------------------------------------
# Pure-JAX reference (for correctness check)
# ----------------------------------------------------------------------------
def _reference(x_nchw, w_oihw, bias, gamma, beta, eps=1e-5):
    y = lax.conv_general_dilated(
        x_nchw, w_oihw, window_strides=(1, 1), padding="SAME",
        dimension_numbers=("NCHW", "OIHW", "NCHW"),
    ) + bias.reshape(1, -1, 1, 1)
    mean = y.mean(axis=(0, 2, 3), keepdims=True)
    var = ((y - mean) ** 2).mean(axis=(0, 2, 3), keepdims=True)   # biased
    yn = (y - mean) / jnp.sqrt(var + eps)
    yn = yn * gamma.reshape(1, -1, 1, 1) + beta.reshape(1, -1, 1, 1)
    return jnp.maximum(yn, 0.0)


if __name__ == "__main__":
    # Small deterministic example, ConvolutionalBlock(in_channels=4, n_filters=32)
    N, Cin, H, W = 2, 4, 16, 16
    Cout = 32

    key = jax.random.PRNGKey(0)
    kx, kw, kb, kg, kbeta = jax.random.split(key, 5)

    x = jax.random.normal(kx, (N, Cin, H, W), jnp.float32)
    w = jax.random.normal(kw, (Cout, Cin, 3, 3), jnp.float32) * 0.1   # Conv2d.weight
    b = jax.random.normal(kb, (Cout,), jnp.float32) * 0.1             # Conv2d.bias
    gamma = 1.0 + 0.1 * jax.random.normal(kg, (Cout,), jnp.float32)   # BN.weight
    beta = 0.1 * jax.random.normal(kbeta, (Cout,), jnp.float32)       # BN.bias

    out = jax.block_until_ready(convolutional_block(x, w, b, gamma, beta))
    ref = _reference(x, w, b, gamma, beta)

    assert out.shape == (N, Cout, H, W)
    max_err = float(jnp.max(jnp.abs(out - ref)))
    # bf16 matmul operands + bf16 conv intermediate -> ~1e-2-scale tolerance.
    assert jnp.allclose(out, ref, rtol=5e-2, atol=5e-2), max_err

    print("KERNEL_OK")
</pallas_src>

<mosaic_0001>
module attributes {stable_mosaic.version = 11 : i64} {
  func.func @_conv_stats_kernel(%arg0: i32, %arg1: memref<1x18x18x4xbf16, #tpu.memory_space<vmem>>, %arg2: memref<36x32xbf16, #tpu.memory_space<vmem>>, %arg3: memref<1x32xf32, #tpu.memory_space<vmem>>, %arg4: memref<1x16x16x32xbf16, #tpu.memory_space<vmem>>, %arg5: memref<1x1x32xf32, #tpu.memory_space<vmem>>, %arg6: memref<1x1x32xf32, #tpu.memory_space<vmem>>) attributes {dimension_semantics = [#tpu.dimension_semantics<parallel>], iteration_bounds = array<i64: 2>, scalar_prefetch = 0 : i64, scratch_operands = 0 : i64, tpu.core_type = #tpu.core_type<tc>, window_params = [{transform_indices = @transform_0, window_bounds = array<i64: 1, 18, 18, 4>}, {pipeline_mode = #tpu.pipeline_mode<synchronous>, transform_indices = @transform_1, window_bounds = array<i64: 36, 32>}, {pipeline_mode = #tpu.pipeline_mode<synchronous>, transform_indices = @transform_2, window_bounds = array<i64: 1, 32>}, {transform_indices = @transform_3, window_bounds = array<i64: 1, 16, 16, 32>}, {transform_indices = @transform_4, window_bounds = array<i64: 1, 1, 32>}, {transform_indices = @transform_5, window_bounds = array<i64: 1, 1, 32>}]} {
    %c0 = arith.constant 0 : index
    %c0_0 = arith.constant 0 : index
    %c0_1 = arith.constant 0 : index
    %c0_2 = arith.constant 0 : index
    %0 = vector.load %arg1[%c0, %c0_0, %c0_1, %c0_2] : memref<1x18x18x4xbf16, #tpu.memory_space<vmem>>, vector<1x16x16x4xbf16>
    %1 = vector.shape_cast %0 : vector<1x16x16x4xbf16> to vector<16x16x4xbf16>
    %c0_3 = arith.constant 0 : index
    %c0_4 = arith.constant 0 : index
    %c1 = arith.constant 1 : index
    %c0_5 = arith.constant 0 : index
    %2 = vector.load %arg1[%c0_3, %c0_4, %c1, %c0_5] : memref<1x18x18x4xbf16, #tpu.memory_space<vmem>>, vector<1x16x16x4xbf16>
    %3 = vector.shape_cast %2 : vector<1x16x16x4xbf16> to vector<16x16x4xbf16>
    %c0_6 = arith.constant 0 : index
    %c0_7 = arith.constant 0 : index
    %c2 = arith.constant 2 : index
    %c0_8 = arith.constant 0 : index
    %4 = vector.load %arg1[%c0_6, %c0_7, %c2, %c0_8] : memref<1x18x18x4xbf16, #tpu.memory_space<vmem>>, vector<1x16x16x4xbf16>
    %5 = vector.shape_cast %4 : vector<1x16x16x4xbf16> to vector<16x16x4xbf16>
    %c0_9 = arith.constant 0 : index
    %c1_10 = arith.constant 1 : index
    %c0_11 = arith.constant 0 : index
    %c0_12 = arith.constant 0 : index
    %6 = vector.load %arg1[%c0_9, %c1_10, %c0_11, %c0_12] : memref<1x18x18x4xbf16, #tpu.memory_space<vmem>>, vector<1x16x16x4xbf16>
    %7 = vector.shape_cast %6 : vector<1x16x16x4xbf16> to vector<16x16x4xbf16>
    %c0_13 = arith.constant 0 : index
    %c1_14 = arith.constant 1 : index
    %c1_15 = arith.constant 1 : index
    %c0_16 = arith.constant 0 : index
    %8 = vector.load %arg1[%c0_13, %c1_14, %c1_15, %c0_16] : memref<1x18x18x4xbf16, #tpu.memory_space<vmem>>, vector<1x16x16x4xbf16>
    %9 = vector.shape_cast %8 : vector<1x16x16x4xbf16> to vector<16x16x4xbf16>
    %c0_17 = arith.constant 0 : index
    %c1_18 = arith.constant 1 : index
    %c2_19 = arith.constant 2 : index
    %c0_20 = arith.constant 0 : index
    %10 = vector.load %arg1[%c0_17, %c1_18, %c2_19, %c0_20] : memref<1x18x18x4xbf16, #tpu.memory_space<vmem>>, vector<1x16x16x4xbf16>
    %11 = vector.shape_cast %10 : vector<1x16x16x4xbf16> to vector<16x16x4xbf16>
    %c0_21 = arith.constant 0 : index
    %c2_22 = arith.constant 2 : index
    %c0_23 = arith.constant 0 : index
    %c0_24 = arith.constant 0 : index
    %12 = vector.load %arg1[%c0_21, %c2_22, %c0_23, %c0_24] : memref<1x18x18x4xbf16, #tpu.memory_space<vmem>>, vector<1x16x16x4xbf16>
    %13 = vector.shape_cast %12 : vector<1x16x16x4xbf16> to vector<16x16x4xbf16>
    %c0_25 = arith.constant 0 : index
    %c2_26 = arith.constant 2 : index
    %c1_27 = arith.constant 1 : index
    %c0_28 = arith.constant 0 : index
    %14 = vector.load %arg1[%c0_25, %c2_26, %c1_27, %c0_28] : memref<1x18x18x4xbf16, #tpu.memory_space<vmem>>, vector<1x16x16x4xbf16>
    %15 = vector.shape_cast %14 : vector<1x16x16x4xbf16> to vector<16x16x4xbf16>
    %c0_29 = arith.constant 0 : index
    %c2_30 = arith.constant 2 : index
    %c2_31 = arith.constant 2 : index
    %c0_32 = arith.constant 0 : index
    %16 = vector.load %arg1[%c0_29, %c2_30, %c2_31, %c0_32] : memref<1x18x18x4xbf16, #tpu.memory_space<vmem>>, vector<1x16x16x4xbf16>
    %17 = vector.shape_cast %16 : vector<1x16x16x4xbf16> to vector<16x16x4xbf16>
    %18 = tpu.concatenate %1, %3, %5, %7, %9, %11, %13, %15, %17 in 2 : vector<16x16x4xbf16>, vector<16x16x4xbf16>, vector<16x16x4xbf16>, vector<16x16x4xbf16>, vector<16x16x4xbf16>, vector<16x16x4xbf16>, vector<16x16x4xbf16>, vector<16x16x4xbf16>, vector<16x16x4xbf16> -> vector<16x16x36xbf16>
    %19 = vector.shape_cast %18 : vector<16x16x36xbf16> to vector<256x36xbf16>
    %c0_33 = arith.constant 0 : index
    %c0_34 = arith.constant 0 : index
    %20 = vector.load %arg2[%c0_33, %c0_34] : memref<36x32xbf16, #tpu.memory_space<vmem>>, vector<36x32xbf16>
    %cst = arith.constant dense<0.000000e+00> : vector<256x32xf32>
    %21 = tpu.matmul %19, %20, %cst {dimension_numbers = #tpu.dot_dimension_numbers<[1], [0], [0], [1], [0, 0, 1, 1], [], []>} : vector<256x36xbf16>, vector<36x32xbf16>, vector<256x32xf32> -> vector<256x32xf32>
    %c0_35 = arith.constant 0 : index
    %c0_36 = arith.constant 0 : index
    %22 = vector.load %arg3[%c0_35, %c0_36] : memref<1x32xf32, #tpu.memory_space<vmem>>, vector<1x32xf32>
    %23 = vector.broadcast %22 : vector<1x32xf32> to vector<256x32xf32>
    %24 = arith.addf %21, %23 : vector<256x32xf32>
    %25 = vector.shape_cast %24 : vector<256x32xf32> to vector<1x16x16x32xf32>
    %26 = arith.truncf %25 : vector<1x16x16x32xf32> to vector<1x16x16x32xbf16>
    %c0_37 = arith.constant 0 : index
    %c0_38 = arith.constant 0 : index
    %c0_39 = arith.constant 0 : index
    %c0_40 = arith.constant 0 : index
    %27 = vector.load %arg4[%c0_37, %c0_38, %c0_39, %c0_40] : memref<1x16x16x32xbf16, #tpu.memory_space<vmem>>, vector<1x16x16x32xbf16>
    tpu.vector_store %arg4[%c0_37, %c0_38, %c0_39, %c0_40], %26 {strides = array<i32>} : memref<1x16x16x32xbf16, #tpu.memory_space<vmem>>, vector<1x16x16x32xbf16>,
    %cst_41 = arith.constant dense<0.000000e+00> : vector<32xf32>
    %28 = vector.multi_reduction <add>, %24, %cst_41 [0] : vector<256x32xf32> to vector<32xf32>
    %29 = vector.shape_cast %28 : vector<32xf32> to vector<1x32xf32>
    %30 = arith.mulf %24, %24 : vector<256x32xf32>
    %cst_42 = arith.constant dense<0.000000e+00> : vector<32xf32>
    %31 = vector.multi_reduction <add>, %30, %cst_42 [0] : vector<256x32xf32> to vector<32xf32>
    %32 = vector.shape_cast %31 : vector<32xf32> to vector<1x32xf32>
    %33 = vector.shape_cast %29 : vector<1x32xf32> to vector<1x1x32xf32>
    %c0_43 = arith.constant 0 : index
    %c0_44 = arith.constant 0 : index
    %c0_45 = arith.constant 0 : index
    %34 = vector.load %arg5[%c0_43, %c0_44, %c0_45] : memref<1x1x32xf32, #tpu.memory_space<vmem>>, vector<1x1x32xf32>
    tpu.vector_store %arg5[%c0_43, %c0_44, %c0_45], %33 {strides = array<i32>} : memref<1x1x32xf32, #tpu.memory_space<vmem>>, vector<1x1x32xf32>,
    %35 = vector.shape_cast %32 : vector<1x32xf32> to vector<1x1x32xf32>
    %c0_46 = arith.constant 0 : index
    %c0_47 = arith.constant 0 : index
    %c0_48 = arith.constant 0 : index
    %36 = vector.load %arg6[%c0_46, %c0_47, %c0_48] : memref<1x1x32xf32, #tpu.memory_space<vmem>>, vector<1x1x32xf32>
    tpu.vector_store %arg6[%c0_46, %c0_47, %c0_48], %35 {strides = array<i32>} : memref<1x1x32xf32, #tpu.memory_space<vmem>>, vector<1x1x32xf32>,
    return
  }
  func.func @transform_0(%arg0: i32) -> (i32, i32, i32, i32) {
    %c0_i32 = arith.constant 0 : i32
    %c0_i32_0 = arith.constant 0 : i32
    %c0_i32_1 = arith.constant 0 : i32
    %c0_i32_2 = arith.constant 0 : i32
    return %arg0, %c0_i32, %c0_i32_0, %c0_i32_1 : i32, i32, i32, i32
  }
  func.func @transform_1(%arg0: i32) -> (i32, i32) {
    %c0_i32 = arith.constant 0 : i32
    %c0_i32_0 = arith.constant 0 : i32
    %c0_i32_1 = arith.constant 0 : i32
    return %c0_i32, %c0_i32_0 : i32, i32
  }
  func.func @transform_2(%arg0: i32) -> (i32, i32) {
    %c0_i32 = arith.constant 0 : i32
    %c0_i32_0 = arith.constant 0 : i32
    %c0_i32_1 = arith.constant 0 : i32
    return %c0_i32, %c0_i32_0 : i32, i32
  }
  func.func @transform_3(%arg0: i32) -> (i32, i32, i32, i32) {
    %c0_i32 = arith.constant 0 : i32
    %c0_i32_0 = arith.constant 0 : i32
    %c0_i32_1 = arith.constant 0 : i32
    %c0_i32_2 = arith.constant 0 : i32
    return %arg0, %c0_i32, %c0_i32_0, %c0_i32_1 : i32, i32, i32, i32
  }
  func.func @transform_4(%arg0: i32) -> (i32, i32, i32) {
    %c0_i32 = arith.constant 0 : i32
    %c0_i32_0 = arith.constant 0 : i32
    %c0_i32_1 = arith.constant 0 : i32
    return %arg0, %c0_i32, %c0_i32_0 : i32, i32, i32
  }
  func.func @transform_5(%arg0: i32) -> (i32, i32, i32) {
    %c0_i32 = arith.constant 0 : i32
    %c0_i32_0 = arith.constant 0 : i32
    %c0_i32_1 = arith.constant 0 : i32
    return %arg0, %c0_i32, %c0_i32_0 : i32, i32, i32
  }
}

module attributes {stable_mosaic.version = 11 : i64} {
  func.func @_bn_relu_kernel(%arg0: i32, %arg1: memref<128x128xbf16, #tpu.memory_space<vmem>>, %arg2: memref<1x128xf32, #tpu.memory_space<vmem>>, %arg3: memref<1x128xf32, #tpu.memory_space<vmem>>, %arg4: memref<128x128xf32, #tpu.memory_space<vmem>>) attributes {dimension_semantics = [#tpu.dimension_semantics<parallel>], iteration_bounds = array<i64: 1>, scalar_prefetch = 0 : i64, scratch_operands = 0 : i64, tpu.core_type = #tpu.core_type<tc>, window_params = [{transform_indices = @transform_0, window_bounds = array<i64: 128, 128>}, {pipeline_mode = #tpu.pipeline_mode<synchronous>, transform_indices = @transform_1, window_bounds = array<i64: 1, 128>}, {pipeline_mode = #tpu.pipeline_mode<synchronous>, transform_indices = @transform_2, window_bounds = array<i64: 1, 128>}, {transform_indices = @transform_3, window_bounds = array<i64: 128, 128>}]} {
    %c0 = arith.constant 0 : index
    %c0_0 = arith.constant 0 : index
    %0 = vector.load %arg1[%c0, %c0_0] : memref<128x128xbf16, #tpu.memory_space<vmem>>, vector<128x128xbf16>
    %1 = arith.extf %0 : vector<128x128xbf16> to vector<128x128xf32>
    %c0_1 = arith.constant 0 : index
    %c0_2 = arith.constant 0 : index
    %2 = vector.load %arg2[%c0_1, %c0_2] : memref<1x128xf32, #tpu.memory_space<vmem>>, vector<1x128xf32>
    %3 = vector.broadcast %2 : vector<1x128xf32> to vector<128x128xf32>
    %4 = arith.mulf %1, %3 : vector<128x128xf32>
    %c0_3 = arith.constant 0 : index
    %c0_4 = arith.constant 0 : index
    %5 = vector.load %arg3[%c0_3, %c0_4] : memref<1x128xf32, #tpu.memory_space<vmem>>, vector<1x128xf32>
    %6 = vector.broadcast %5 : vector<1x128xf32> to vector<128x128xf32>
    %7 = arith.addf %4, %6 : vector<128x128xf32>
    %cst = arith.constant 0.000000e+00 : f32
    %8 = vector.broadcast %cst : f32 to vector<128x128xf32>
    %9 = arith.maximumf %7, %8 : vector<128x128xf32>
    %c0_5 = arith.constant 0 : index
    %c0_6 = arith.constant 0 : index
    %10 = vector.load %arg4[%c0_5, %c0_6] : memref<128x128xf32, #tpu.memory_space<vmem>>, vector<128x128xf32>
    tpu.vector_store %arg4[%c0_5, %c0_6], %9 {strides = array<i32>} : memref<128x128xf32, #tpu.memory_space<vmem>>, vector<128x128xf32>,
    return
  }
  func.func @transform_0(%arg0: i32) -> (i32, i32) {
    %c0_i32 = arith.constant 0 : i32
    %c0_i32_0 = arith.constant 0 : i32
    return %arg0, %c0_i32 : i32, i32
  }
  func.func @transform_1(%arg0: i32) -> (i32, i32) {
    %c0_i32 = arith.constant 0 : i32
    %c0_i32_0 = arith.constant 0 : i32
    %c0_i32_1 = arith.constant 0 : i32
    return %c0_i32, %c0_i32_0 : i32, i32
  }
  func.func @transform_2(%arg0: i32) -> (i32, i32) {
    %c0_i32 = arith.constant 0 : i32
    %c0_i32_0 = arith.constant 0 : i32
    %c0_i32_1 = arith.constant 0 : i32
    return %c0_i32, %c0_i32_0 : i32, i32
  }
  func.func @transform_3(%arg0: i32) -> (i32, i32) {
    %c0_i32 = arith.constant 0 : i32
    %c0_i32_0 = arith.constant 0 : i32
    return %arg0, %c0_i32 : i32, i32
  }
}

</mosaic_0001>

<bundles_post_ra>
// kernel: tile.18
= control target key start
LH: loop header
LB: loop body
LE: loop exit
PB: predicated region body
PF: predicated region fallthrough
CT: control target
= control target key end

     0   :  { %s22_s0 = inlined_call_operand.vmem [shape: f32[32], index: 0, kind: input, shape index: {}]   ;;  %s23_s1 = inlined_call_operand.vmem [shape: f32[4,32], index: 1, kind: output, shape index: {}]  }
   0x1   :  { %v4_v0 = vld [vmem:[%s22_s0] ss:$0 sm:$0xff] }
   0x2   :  { %5 = vst [vmem:[%s23_s1] sm:$0xf] %v4_v0 }

// kernel: tile.19
= control target key start
LH: loop header
LB: loop body
LE: loop exit
PB: predicated region body
PF: predicated region fallthrough
CT: control target
= control target key end

     0   :  { %vm7_vm0 = vcmask 261120   ;;  %s37_s8 = smov 32   ;;  %s38_s9 = smov 64   ;;  %vm13_vm1 = vcmask 1048320   ;;  %vm19_vm2 = vcmask 785920   ;;  %vm25_vm3 = vcmask 523520   ;;  %s55_s0 = inlined_call_operand.vmem [shape: f32[4,32], index: 0, kind: input, shape index: {}]   ;;  %s56_s1 = inlined_call_operand.vmem [shape: f32[1,128], index: 1, kind: output, shape index: {}]  }
   0x1   :  { %v4_v0 = vld [vmem:[%s55_s0] sm:$0xf]  ;;  %s36_s0 = smov 96  }
   0x2   :  { %5 = vst [vmem:[#allocation1] sm:$0xf] %v4_v0 }
   0x9   :  { %v10_v1 = vld [vmem:[#allocation1 + $0x3] sm:$0x1]   ;;  %v22_v2 = vld [vmem:[#allocation1 + $0x1] sm:$0x1]   ;;  %v6_v3 = vld [vmem:[#allocation1] sm:$0x1]  }
   0xa   :  { %11 = vrot.lane.b32.xlu0 %v10_v1, %s36_s0  ;;  %23 = vrot.lane.b32.xlu1 %v22_v2, %s37_s8  ;;  %v16_v4 = vld [vmem:[#allocation1 + $0x2] sm:$0x1]   ;;  %8 = vst.msk [vmem:[#allocation0] sm:$0x1] %vm7_vm0, %v6_v3  }
   0xe   :  { %17 = vrot.lane.b32.xlu0 %v16_v4, %s38_s9 }
  0x7c   :  { %v12_v5 = vpop.permute.xlu0 %11   ;;  %v24_v6 = vpop.permute.xlu1 %23  }
  0x7d   :  { %14 = vst.msk [vmem:[#allocation0] sm:$0x1] %vm13_vm1, %v12_v5  }
  0x80   :  { %v18_v7 = vpop.permute.xlu0 %17  }
  0x81   :  { %20 = vst.msk [vmem:[#allocation0] sm:$0x1] %vm19_vm2, %v18_v7  }
  0x82   :  { %26 = vst.msk [vmem:[#allocation0] sm:$0x1] %vm25_vm3, %v24_v6  }
  0x89   :  { %v30_v8 = vld [vmem:[#allocation0] sm:$0x1] }
  0x8a   :  { %32 = vst [vmem:[%s56_s1] sm:$0x1] %v30_v8 }

// kernel: convolutional_block.3
= control target key start
LH: loop header
LB: loop body
LE: loop exit
PB: predicated region body
PF: predicated region fallthrough
CT: control target
= control target key end

     0   :  { %s303_s0 = inlined_call_operand.vmem [shape: bf16[128,128], index: 0, kind: input, shape index: {}]   ;;  %s304_s1 = inlined_call_operand.vmem [shape: f32[1,128], index: 1, kind: input, shape index: {}]   ;;  %s305_s2 = inlined_call_operand.vmem [shape: f32[1,128], index: 2, kind: input, shape index: {}]   ;;  %s306_s3 = inlined_call_operand.vmem [shape: f32[128,128], index: 3, kind: output, shape index: {}]  }
   0x1   :  { %v131_v0 = vld [vmem:[%s303_s0] sm:$0xff]   ;;  %v162_v4 = vld [vmem:[%s303_s0 + $0x8] sm:$0xff]   ;;  %v163_v5 = vld [vmem:[%s303_s0 + $0x10] sm:$0xff]  }
   0x2   :  { %v195_v1 = vld [vmem:[%s304_s1] ss:$0 sm:$0xff]  ;;  %v132_v2 = vunpack.c.l.bf16 %v131_v0  ;;  %v133_v3 = vunpack.c.h.bf16 %v131_v0  ;;  %v164_v6 = vld [vmem:[%s303_s0 + $0x18] sm:$0xff]   ;;  %v136_v8 = vunpack.c.l.bf16 %v162_v4  ;;  %v137_v9 = vunpack.c.h.bf16 %v162_v4  ;;  %v166_v33 = vld [vmem:[%s303_s0 + $0x28] sm:$0xff]  }
   0x3   :  { %v209_v7 = vld [vmem:[%s305_s2] ss:$0 sm:$0xff]  ;;  %v140_v10 = vunpack.c.l.bf16 %v163_v5  ;;  %v141_v11 = vunpack.c.h.bf16 %v163_v5  ;;  %v144_v14 = vunpack.c.l.bf16 %v164_v6  ;;  %v145_v15 = vunpack.c.h.bf16 %v164_v6  ;;  %v167_v34 = vld [vmem:[%s303_s0 + $0x30] sm:$0xff]   ;;  %v168_v39 = vld [vmem:[%s303_s0 + $0x38] sm:$0xff]  }
   0x4   :  { %v53_v12 = vmul.f32 %v132_v2, %v195_v1  ;;  %v54_v13 = vmul.f32 %v133_v3, %v195_v1  ;;  %v55_v16 = vmul.f32 %v136_v8, %v195_v1  ;;  %v56_v17 = vmul.f32 %v137_v9, %v195_v1  ;;  %v165_v28 = vld [vmem:[%s303_s0 + $0x20] sm:$0xff]  }
   0x5   :  { %v57_v18 = vmul.f32 %v140_v10, %v195_v1  ;;  %v58_v19 = vmul.f32 %v141_v11, %v195_v1  ;;  %v59_v22 = vmul.f32 %v144_v14, %v195_v1  ;;  %v60_v23 = vmul.f32 %v145_v15, %v195_v1 }
   0x6   :  { %v76_v20 = vadd.f32 %v209_v7, %v53_v12  ;;  %v77_v21 = vadd.f32 %v209_v7, %v54_v13  ;;  %v78_v24 = vadd.f32 %v209_v7, %v55_v16  ;;  %v79_v25 = vadd.f32 %v209_v7, %v56_v17 }
   0x7   :  { %v80_v26 = vadd.f32 %v209_v7, %v57_v18  ;;  %v81_v27 = vadd.f32 %v209_v7, %v58_v19  ;;  %v82_v31 = vadd.f32 %v209_v7, %v59_v22  ;;  %v83_v32 = vadd.f32 %v209_v7, %v60_v23 }
   0x8   :  { %v92_v29 = vmax.f32 %v76_v20, 0.0  ;;  %v93_v30 = vmax.f32 %v77_v21, 0.0  ;;  %v94_v35 = vmax.f32 %v78_v24, 0.0  ;;  %v95_v36 = vmax.f32 %v79_v25, 0.0 }
   0x9   :  { %v96_v37 = vmax.f32 %v80_v26, 0.0  ;;  %v97_v38 = vmax.f32 %v81_v27, 0.0  ;;  %v98_v40 = vmax.f32 %v82_v31, 0.0  ;;  %v99_v41 = vmax.f32 %v83_v32, 0.0 }
   0xa   :  { %108 = vst [vmem:[%s306_s3] sm:$0xff] %v92_v29  ;;  %109 = vst [vmem:[%s306_s3 + $0x8] sm:$0xff] %v93_v30  ;;  %v148_v42 = vunpack.c.l.bf16 %v165_v28  ;;  %v149_v43 = vunpack.c.h.bf16 %v165_v28  ;;  %v152_v44 = vunpack.c.l.bf16 %v166_v33  ;;  %v153_v45 = vunpack.c.h.bf16 %v166_v33 }
   0xb   :  { %110 = vst [vmem:[%s306_s3 + $0x10] sm:$0xff] %v94_v35  ;;  %111 = vst [vmem:[%s306_s3 + $0x18] sm:$0xff] %v95_v36  ;;  %v156_v46 = vunpack.c.l.bf16 %v167_v34  ;;  %v157_v47 = vunpack.c.h.bf16 %v167_v34  ;;  %v160_v50 = vunpack.c.l.bf16 %v168_v39  ;;  %v161_v51 = vunpack.c.h.bf16 %v168_v39 }
   0xc   :  { %112 = vst [vmem:[%s306_s3 + $0x20] sm:$0xff] %v96_v37  ;;  %113 = vst [vmem:[%s306_s3 + $0x28] sm:$0xff] %v97_v38  ;;  %v61_v48 = vmul.f32 %v148_v42, %v195_v1  ;;  %v62_v49 = vmul.f32 %v149_v43, %v195_v1  ;;  %v63_v52 = vmul.f32 %v152_v44, %v195_v1 }
   0xd   :  { %114 = vst [vmem:[%s306_s3 + $0x30] sm:$0xff] %v98_v40  ;;  %115 = vst [vmem:[%s306_s3 + $0x38] sm:$0xff] %v99_v41  ;;  %v64_v53 = vmul.f32 %v153_v45, %v195_v1  ;;  %v65_v54 = vmul.f32 %v156_v46, %v195_v1  ;;  %v66_v55 = vmul.f32 %v157_v47, %v195_v1 }
   0xe   :  { %v84_v56 = vadd.f32 %v209_v7, %v61_v48  ;;  %v85_v57 = vadd.f32 %v209_v7, %v62_v49  ;;  %v67_v58 = vmul.f32 %v160_v50, %v195_v1  ;;  %v68_v59 = vmul.f32 %v161_v51, %v195_v1 }
   0xf   :  { %v86_v60 = vadd.f32 %v209_v7, %v63_v52  ;;  %v87_v61 = vadd.f32 %v209_v7, %v64_v53  ;;  %v88_v62 = vadd.f32 %v209_v7, %v65_v54  ;;  %v89_v63 = vadd.f32 %v209_v7, %v66_v55 }
  0x10   :  { %v100_v0 = vmax.f32 %v84_v56, 0.0  ;;  %v101_v2 = vmax.f32 %v85_v57, 0.0  ;;  %v90_v3 = vadd.f32 %v209_v7, %v67_v58  ;;  %v91_v4 = vadd.f32 %v209_v7, %v68_v59 }
  0x11   :  { %v102_v5 = vmax.f32 %v86_v60, 0.0  ;;  %v103_v6 = vmax.f32 %v87_v61, 0.0  ;;  %v104_v8 = vmax.f32 %v88_v62, 0.0  ;;  %v105_v9 = vmax.f32 %v89_v63, 0.0 }
  0x12   :  { %116 = vst [vmem:[%s306_s3 + $0x40] sm:$0xff] %v100_v0  ;;  %117 = vst [vmem:[%s306_s3 + $0x48] sm:$0xff] %v101_v2  ;;  %v106_v1 = vmax.f32 %v90_v3, 0.0  ;;  %v107_v10 = vmax.f32 %v91_v4, 0.0 }
  0x13   :  { %118 = vst [vmem:[%s306_s3 + $0x50] sm:$0xff] %v102_v5  ;;  %119 = vst [vmem:[%s306_s3 + $0x58] sm:$0xff] %v103_v6 }
  0x14   :  { %120 = vst [vmem:[%s306_s3 + $0x60] sm:$0xff] %v104_v8  ;;  %121 = vst [vmem:[%s306_s3 + $0x68] sm:$0xff] %v105_v9 }
  0x15   :  { %122 = vst [vmem:[%s306_s3 + $0x70] sm:$0xff] %v106_v1  ;;  %123 = vst [vmem:[%s306_s3 + $0x78] sm:$0xff] %v107_v10 }

// kernel: convolutional_block.2
= control target key start
LH: loop header
LB: loop body
LE: loop exit
PB: predicated region body
PF: predicated region fallthrough
CT: control target
= control target key end

     0   :  { %s3513_s18 = smov 0   ;;  %s4757_s0 = inlined_call_operand.vmem [shape: bf16[2,18,18,4], index: 0, kind: input, shape index: {}]   ;;  %s4758_s1 = inlined_call_operand.vmem [shape: bf16[36,32], index: 1, kind: input, shape index: {}]   ;;  %s4759_s2 = inlined_call_operand.vmem [shape: f32[1,32], index: 2, kind: input, shape index: {}]   ;;  %s4760_s3 = inlined_call_operand.vmem [shape: bf16[2,16,16,32], index: 3, kind: output, shape index: {0}]   ;;  %s4761_s4 = inlined_call_operand.vmem [shape: f32[2,1,32], index: 4, kind: output, shape index: {1}]   ;;  %s4762_s5 = inlined_call_operand.vmem [shape: f32[2,1,32], index: 5, kind: output, shape index: {2}]  }
   0x1 LB: > { %s2871_s19 = sadd.s32 4294967295, %s3473_s18   ;;  %p2875_p0 = scmp.ge.s32.totalorder %s3473_s18, 1  ;;  %s3473_s18 = sphi %s3513_s18, %s16_s18  }
   0x2   : > { %p192_p1 = scmp.lt.s32.totalorder %s3473_s18, 3 }
   0x4   : > { %p193_p2 = pnand %p2875_p0, %p192_p1 }
   0x5   : > { %p226_p3 = scmp.lt.s32.totalorder (!%p193_p2), %s2871_s19, 1  ;;  %vm838_vm0 = vcmask (!%p193_p2), 1046528   ;;  %s3475_s24 = smov (!%p193_p2), 12   ;;  %vm565_vm1 = vsmask.f32 (!%p193_p2), 7424  ;;  %v3398_v57 = vld [vmem:[%s4758_s1] sm:$0xff] (!%p193_p2)  }
   0x6   : > { %196 = sbr.rel (%p193_p2) target bundleno = 632 (0x278), region = 32  ;;  %s3476_s25 = smov (!%p193_p2), 20   ;;  %3257 = vmatprep.subr.bf16.mxu0 (!%p193_p2), %v3398_v57  ;;  %3295 = vmatprep.subr.bf16.mxu1 (!%p193_p2), %v3398_v57  ;;  %vm2267_vm2 = vcmask (!%p193_p2), 1041408   ;;  %vm1943_vm3 = vcmask (!%p193_p2), 31744   ;;  %vm1976_vm4 = vcmask (!%p193_p2), 64512   ;;  %vm2009_vm5 = vcmask (!%p193_p2), 97280  }
   0x7   : > { %s3477_s26 = smov (!%p193_p2), 8   ;;  %s3478_s29 = smov (!%p193_p2), 4   ;;  %3258 = vmatpush3.bf16.msra.mxu0 (!%p193_p2), %v3398_v57  ;;  %3298 = vmatpush3.bf16.msra.mxu1 (!%p193_p2), %v3398_v57  ;;  %vm2042_vm6 = vcmask (!%p193_p2), 130048   ;;  %vm2075_vm7 = vcmask (!%p193_p2), 162816   ;;  %vm2108_vm8 = vcmask (!%p193_p2), 195584   ;;  %vm2141_vm9 = vcmask (!%p193_p2), 228352  }
   0x8   : > { %s3479_s7 = smov (!%p193_p2), 16   ;;  %s3480_s8 = smov (!%p193_p2), 24   ;;  %vm2174_vm10 = vcmask (!%p193_p2), 261120   ;;  %vm2234_vm11 = vcmask (!%p193_p2), 293888   ;;  %vm2560_vm12 = vcmask (!%p193_p2), 257024   ;;  %vm2763_vm13 = vcmask (!%p193_p2), 253952  }
   0x9   : > { %s3481_s9 = smov (!%p193_p2), 28   ;;  %s3482_s10 = smov (!%p193_p2), 32  }
   0xd   : > { %s4764_s19 = smov (!%p226_p3, %s2871_s19), 1 }
   0xe   : > { %s3303_s20 = smul.u32 216, %s4764_s19  ;;  %s3205_s15 = sshll.u32 %s4764_s19, 7 }
  0x10   : > { %s3527_s23 = scalar_lea.vmem %s4757_s0, %s3303_s20  ;;  %s4572_s20 = scalar_lea.vmem %s4760_s3, %s3205_s15 }
  0x11   : > { %v2881_v0 = vld [vmem:[%s3527_s23 + $0x18] sm:$0xf]  ;;  %v2882_v1 = vld [vmem:[%s3527_s23 + $0x1c] sm:$0xf]  ;;  %v2879_v5 = vld [vmem:[%s3527_s23 + $0xc] sm:$0xf] }
  0x12   : > { %v2928_v2 = vld [vmem:[%s3527_s23 + $0x18] sm:$0xe]  ;;  %v3532_v3 = vcombine.low %v2881_v0, %v2882_v1  ;;  %v2880_v6 = vld [vmem:[%s3527_s23 + $0x10] sm:$0xf]  ;;  %v2927_v7 = vld [vmem:[%s3527_s23 + $0xc] sm:$0xe] }
  0x13   : > { %v3088_v4 = vcombine.low %v2928_v2, %v2882_v1  ;;  %v3537_v8 = vcombine.low %v2879_v5, %v2880_v6  ;;  %v3087_v9 = vcombine.low %v2927_v7, %v2880_v6  ;;  %v3540_v10 = vld [vmem:[%s3527_s23 + $0x14] ss:$0 sps:$4 sm:$0x11]   ;;  %v244_v12 = vld [vmem:[%s3527_s23 + $0x4] sm:$0xf] }
  0x14   : > { %1001 = vrot.lane.b32.xlu1 %v3532_v3, %s3475_s24  ;;  %v1094_v11 = vshll.u32 %v3532_v3, 16  ;;  %v1352_v15 = vrot.slane %v3540_v10, 1  ;;  %v291_v16 = vld [vmem:[%s3527_s23] sm:$0xe]  ;;  %v1092_v21 = vshrl.u32 %v3532_v3, 16  ;;  %v1087_v60 = vshll.u32 %v3540_v10, 16 }
  0x15   : > { %999 = vrot.lane.b32.xlu0 %v3537_v8, %s3475_s24  ;;  %v1082_v13 = vshll.u32 %v3537_v8, 16  ;;  %v1351_v14 = vrot.slane %v3087_v9, 1  ;;  %v1354_v17 = vrot.slane %v3088_v4, 1  ;;  %v3325_v18 = vld [vmem:[%s3527_s23 + $0x8] ss:$0 sps:$4 sm:$0x11]   ;;  %v3039_v19 = vcombine.low %v291_v16, %v244_v12 }
  0x16   : > { %v243_v20 = vld [vmem:[%s3527_s23] sm:$0xf]  ;;  %v245_v24 = vld [vmem:[%s3527_s23 + $0xc] sm:$0xf]  ;;  %v246_v25 = vld [vmem:[%s3527_s23 + $0x10] sm:$0xf] }
  0x17   : > { %v1353_v22 = vsel %vm838_vm0, %v1351_v14, %v1352_v15  ;;  %v3555_v23 = vcombine.low %v243_v20, %v244_v12  ;;  %v839_v26 = vrot.slane %v3039_v19, 1  ;;  %v840_v27 = vrot.slane %v3325_v18, 1  ;;  %v292_v28 = vld [vmem:[%s3527_s23 + $0xc] sm:$0xe]  ;;  %v2945_v43 = vld [vmem:[%s3527_s23 + $0x24] sm:$0xf] }
  0x18   : > { %v3560_v29 = vcombine.low %v245_v24, %v246_v25  ;;  %v574_v30 = vshll.u32 %v3325_v18, 16  ;;  %v3329_v31 = vld [vmem:[%s3527_s23 + $0x14] ss:$0 sps:$4 sm:$0x11]   ;;  %v3040_v32 = vcombine.low %v292_v28, %v246_v25  ;;  %v1096_v35 = vrot.slane %v1094_v11, 1  ;;  %v3403_v12 = vld [vmem:[%s4758_s1 + $0x8] sm:$0xff]  }
  0x19   : > { %1399 = vrot.lane.b32.xlu0 %v1353_v22, %s3476_s25  ;;  %v567_v33 = vshrl.u32 %v3555_v23, 16  ;;  %v569_v34 = vshll.u32 %v3555_v23, 16  ;;  %v841_v36 = vsel %vm838_vm0, %v839_v26, %v840_v27  ;;  %v3331_v38 = vld [vmem:[%s3527_s23 + $0x20] ss:$0 sps:$4 sm:$0x11]   ;;  %v843_v40 = vrot.slane %v3329_v31, 1  ;;  %3259 = vmatprep.subr.bf16.mxu0 %v3403_v12 }
  0x1a   : > { %v576_v37 = vrot.slane %v574_v30, 1  ;;  %887 = vrot.lane.b32.xlu1 %v841_v36, %s3477_s26  ;;  %v842_v39 = vrot.slane %v3040_v32, 1  ;;  %v579_v42 = vshrl.u32 %v3560_v29, 16  ;;  %v1355_v44 = vrot.slane %v3331_v38, 1  ;;  %v3573_v48 = vld [vmem:[%s3527_s23 + $0x28] sm:$0xf]  ;;  %3296 = vmatprep.subr.bf16.mxu1 %v3403_v12 }
  0x1b   : > { %v571_v41 = vrot.slane %v569_v34, 1  ;;  %v581_v45 = vshll.u32 %v3560_v29, 16  ;;  %v586_v46 = vshll.u32 %v3329_v31, 16  ;;  %v1099_v47 = vshll.u32 %v3331_v38, 16  ;;  %v2943_v53 = vld [vmem:[%s3527_s23 + $0x18] sm:$0xf]  ;;  %3260 = vmatpush3.bf16.msra.mxu0 %v3403_v12  ;;  %3299 = vmatpush3.bf16.msra.mxu1 %v3403_v12 }
  0x1c   : > { %v844_v49 = vsel %vm838_vm0, %v842_v39, %v843_v40  ;;  %v1080_v51 = vshrl.u32 %v3537_v8, 16  ;;  %v1084_v52 = vrot.slane %v1082_v13, 1  ;;  %v3579_v56 = vld [vmem:[%s3527_s23 + $0x1c] sm:$0xf]  ;;  %v1097_v59 = vor.u32 %v1096_v35, %v1092_v21  ;;  %v2991_v6 = vld [vmem:[%s3527_s23 + $0x18] sm:$0xe] }
  0x1d   : > { %v572_v50 = vor.u32 %v571_v41, %v567_v33  ;;  %v583_v54 = vrot.slane %v581_v45, 1  ;;  %v588_v55 = vrot.slane %v586_v46, 1  ;;  %v3104_v61 = vcombine.low %v2945_v43, %v3573_v48  ;;  %v3592_v2 = vld [vmem:[%s3527_s23 + $0x2c] ss:$0 sps:$4 sm:$0x11]  }
  0x1e   : > { %889 = vrot.lane.b32.xlu1 %v844_v49, %s3477_s26  ;;  %v1356_v62 = vsel %vm838_vm0, %v1354_v17, %v1355_v44  ;;  %v1101_v0 = vrot.slane %v1099_v47, 1  ;;  %v3103_v1 = vcombine.low %v2943_v53, %v3579_v56  ;;  %v1085_v3 = vor.u32 %v1084_v52, %v1080_v51  ;;  %v3596_v7 = vld [vmem:[%s3527_s23 + $0x20] ss:$0 sps:$4 sm:$0x11]   ;;  %v247_v11 = vld [vmem:[%s3527_s23 + $0x18] sm:$0xf] }
  0x1f   : > { %v577_v58 = vsel %vm565_vm1, %v572_v50, %v576_v37  ;;  %v584_v63 = vor.u32 %v583_v54, %v579_v42  ;;  %v1089_v4 = vrot.slane %v1087_v60, 1  ;;  %v1606_v5 = vshll.u32 %v3104_v61, 16  ;;  %v3606_v15 = vld [vmem:[%s3527_s23 + $0x1c] sm:$0xf]  ;;  %v249_v24 = vld [vmem:[%s3527_s23 + $0x24] sm:$0xf] }
  0x20   : > { %758 = vrot.lane.b32.xlu0 %v577_v58, %s3478_s29  ;;  %v1594_v9 = vshll.u32 %v3103_v1, 16  ;;  %v1604_v10 = vshrl.u32 %v3104_v61, 16  ;;  %v1611_v14 = vshll.u32 %v3592_v2, 16  ;;  %v1102_v16 = vsel %vm565_vm1, %v1097_v59, %v1101_v0  ;;  %v3614_v19 = vld [vmem:[%s3527_s23 + $0x20] ss:$0 sps:$4 sm:$0x11]  }
  0x21   : > { %v589_v8 = vsel %vm565_vm1, %v584_v63, %v588_v55  ;;  %v1608_v13 = vrot.slane %v1606_v5, 1  ;;  %v1592_v17 = vshrl.u32 %v3103_v1, 16  ;;  %v3611_v18 = vcombine.low %v247_v11, %v3606_v15  ;;  %v250_v25 = vld [vmem:[%s3527_s23 + $0x28] sm:$0xf]  ;;  %v2992_v39 = vld [vmem:[%s3527_s23 + $0x24] sm:$0xe] }
  0x22   : > { %1401 = vrot.lane.b32.xlu1 %v1356_v62, %s3476_s25  ;;  %v1090_v20 = vsel %vm565_vm1, %v1085_v3, %v1089_v4  ;;  %v1596_v21 = vrot.slane %v1594_v9, 1  ;;  %v1599_v22 = vshll.u32 %v3596_v7, 16  ;;  %v3135_v26 = vcombine.low %v2991_v6, %v3579_v56  ;;  %v3341_v35 = vld [vmem:[%s3527_s23 + $0x2c] ss:$0 sps:$4 sm:$0x11]  }
  0x23   : > { %v593_v27 = vshll.u32 %v3611_v18, 16  ;;  %v1609_v28 = vor.u32 %v1608_v13, %v1604_v10  ;;  %v1613_v30 = vrot.slane %v1611_v14, 1  ;;  %v598_v31 = vshll.u32 %v3614_v19, 16  ;;  %v294_v44 = vld [vmem:[%s3527_s23 + $0x24] sm:$0xe] }
  0x24   : > { %760 = vrot.lane.b32.xlu0 %v589_v8, %s3478_s29  ;;  %v3624_v32 = vcombine.low %v249_v24, %v250_v25  ;;  %v591_v33 = vshrl.u32 %v3611_v18, 16  ;;  %v1597_v36 = vor.u32 %v1596_v21, %v1592_v17  ;;  %v1601_v37 = vrot.slane %v1599_v22, 1  ;;  %v293_v50 = vld [vmem:[%s3527_s23 + $0x18] sm:$0xe]  ;;  %v2885_v53 = vld [vmem:[%s3527_s23 + $0x30] sm:$0xf] }
  0x25   : > { %v595_v34 = vrot.slane %v593_v27, 1  ;;  %v1614_v40 = vsel %vm565_vm1, %v1609_v28, %v1613_v30  ;;  %v600_v41 = vrot.slane %v598_v31, 1  ;;  %v1863_v42 = vrot.slane %v3135_v26, 1  ;;  %v2886_v54 = vld [vmem:[%s3527_s23 + $0x34] sm:$0xf] }
  0x26   : > { %1273 = vrot.lane.b32.xlu1 %v1102_v16, %s3479_s7  ;;  %v605_v38 = vshll.u32 %v3624_v32, 16  ;;  %v1864_v43 = vrot.slane %v3596_v7, 1  ;;  %v603_v46 = vshrl.u32 %v3624_v32, 16  ;;  %v610_v49 = vshll.u32 %v3341_v35, 16  ;;  %v2883_v55 = vld [vmem:[%s3527_s23 + $0x24] sm:$0xf] }
  0x27   : > { %v596_v45 = vor.u32 %v595_v34, %v591_v33  ;;  %v3136_v51 = vcombine.low %v2992_v39, %v3573_v48  ;;  %v1602_v52 = vsel %vm565_vm1, %v1597_v36, %v1601_v37  ;;  %v2884_v56 = vld [vmem:[%s3527_s23 + $0x28] sm:$0xf]  ;;  %v3042_v58 = vcombine.low %v294_v44, %v250_v25  ;;  %v3652_v3 = vld [vmem:[%s3527_s23 + $0x38] ss:$0 sps:$4 sm:$0x11]  }
  0x28   : > { %1271 = vrot.lane.b32.xlu0 %v1090_v20, %s3479_s7  ;;  %v607_v47 = vrot.slane %v605_v38, 1  ;;  %v1865_v57 = vsel %vm838_vm0, %v1863_v42, %v1864_v43  ;;  %v3058_v48 = vcombine.low %v2885_v53, %v2886_v54  ;;  %v1867_v63 = vrot.slane %v3592_v2, 1  ;;  %v3349_v11 = vld [vmem:[%s3527_s23 + $0x2c] ss:$0 sps:$4 sm:$0x11]  }
  0x29   : > { %v601_v59 = vsel %vm565_vm1, %v596_v45, %v600_v41  ;;  %v1866_v62 = vrot.slane %v3136_v51, 1  ;;  %v3041_v0 = vcombine.low %v293_v50, %v3606_v15  ;;  %v848_v5 = vrot.slane %v3042_v58, 1  ;;  %v2930_v12 = vld [vmem:[%s3527_s23 + $0x30] sm:$0xe]  ;;  %v2929_v13 = vld [vmem:[%s3527_s23 + $0x24] sm:$0xe] }
  0x2a   : > { %1513 = vrot.lane.b32.xlu1 %v3104_v61, %s3480_s8  ;;  %v608_v60 = vor.u32 %v607_v47, %v603_v46  ;;  %v612_v61 = vrot.slane %v610_v49, 1  ;;  %v849_v6 = vrot.slane %v3341_v35, 1  ;;  %v1118_v7 = vshll.u32 %v3058_v48, 16  ;;  %v2949_v21 = vld [vmem:[%s3527_s23 + $0x3c] sm:$0xf] }
  0x2b   : > { %v1868_v2 = vsel %vm838_vm0, %v1866_v62, %v1867_v63  ;;  %v845_v8 = vrot.slane %v3041_v0, 1  ;;  %v846_v9 = vrot.slane %v3614_v19, 1  ;;  %v1116_v14 = vshrl.u32 %v3058_v48, 16  ;;  %v3667_v22 = vld [vmem:[%s3527_s23 + $0x40] sm:$0xf] }
  0x2c   : > { %1511 = vrot.lane.b32.xlu0 %v3103_v1, %s3480_s8  ;;  %v3057_v1 = vcombine.low %v2883_v55, %v2884_v56  ;;  %v613_v4 = vsel %vm565_vm1, %v608_v60, %v612_v61  ;;  %v1123_v15 = vshll.u32 %v3652_v3, 16  ;;  %v850_v16 = vsel %vm838_vm0, %v848_v5, %v849_v6  ;;  %v2947_v26 = vld [vmem:[%s3527_s23 + $0x30] sm:$0xf]  ;;  %v2948_v27 = vld [vmem:[%s3527_s23 + $0x34] sm:$0xf] }
  0x2d   : > { %v1120_v17 = vrot.slane %v1118_v7, 1  ;;  %v847_v19 = vsel %vm838_vm0, %v845_v8, %v846_v9  ;;  %v1111_v25 = vshll.u32 %v3349_v11, 16  ;;  %v3090_v28 = vcombine.low %v2930_v12, %v2886_v54  ;;  %v251_v38 = vld [vmem:[%s3527_s23 + $0x30] sm:$0xf]  ;;  %v3677_v39 = vld [vmem:[%s3527_s23 + $0x34] sm:$0xf] }
  0x2e   : > { %1785 = vrot.lane.b32.xlu1 %v1614_v40, %s3481_s9  ;;  %v1106_v10 = vshll.u32 %v3057_v1, 16  ;;  %v1104_v20 = vshrl.u32 %v3057_v1, 16  ;;  %v3089_v30 = vcombine.low %v2929_v13, %v2884_v56  ;;  %v3106_v31 = vcombine.low %v2949_v21, %v3667_v22  ;;  %v3682_v45 = vld [vmem:[%s3527_s23 + $0x44] ss:$0 sps:$4 sm:$0x11]  }
  0x2f   : > { %v1121_v33 = vor.u32 %v1120_v17, %v1116_v14  ;;  %v1125_v34 = vrot.slane %v1123_v15, 1  ;;  %v3105_v35 = vcombine.low %v2947_v26, %v2948_v27  ;;  %v1113_v37 = vrot.slane %v1111_v25, 1  ;;  %v3355_v49 = vld [vmem:[%s3527_s23 + $0x38] ss:$0 sps:$4 sm:$0x11]  }
  0x30   : > { %1783 = vrot.lane.b32.xlu0 %v1602_v52, %s3481_s9  ;;  %v1108_v24 = vrot.slane %v1106_v10, 1  ;;  %v1360_v40 = vrot.slane %v3090_v28, 1  ;;  %v1361_v41 = vrot.slane %v3652_v3, 1  ;;  %v1357_v42 = vrot.slane %v3089_v30, 1  ;;  %v253_v52 = vld [vmem:[%s3527_s23 + $0x3c] sm:$0xf] }
  0x31   : > { %v1358_v43 = vrot.slane %v3349_v11, 1  ;;  %v1630_v44 = vshll.u32 %v3106_v31, 16  ;;  %v1126_v46 = vsel %vm565_vm1, %v1121_v33, %v1125_v34  ;;  %v1618_v47 = vshll.u32 %v3105_v35, 16  ;;  %v254_v53 = vld [vmem:[%s3527_s23 + $0x40] sm:$0xf] }
  0x32   : > { %762 = vrot.lane.b32.xlu1 %v601_v59, %s3478_s29  ;;  %v1109_v36 = vor.u32 %v1108_v24, %v1104_v20  ;;  %v3688_v50 = vcombine.low %v251_v38, %v3677_v39  ;;  %v1628_v54 = vshrl.u32 %v3106_v31, 16  ;;  %v1635_v56 = vshll.u32 %v3682_v45, 16  ;;  %v2993_v59 = vld [vmem:[%s3527_s23 + $0x30] sm:$0xe]  ;;  %v296_v24 = vld [vmem:[%s3527_s23 + $0x3c] sm:$0xe] }
  0x33   : > { %v1632_v55 = vrot.slane %v1630_v44, 1  ;;  %v1362_v58 = vsel %vm838_vm0, %v1360_v40, %v1361_v41  ;;  %v3702_v61 = vcombine.low %v253_v52, %v254_v53  ;;  %v1616_v62 = vshrl.u32 %v3105_v35, 16  ;;  %v3359_v8 = vld [vmem:[%s3527_s23 + $0x44] ss:$0 sps:$4 sm:$0x11]  }
  0x34   : > { %1911 = vrot.lane.b32.xlu0 %v1865_v57, %s3482_s10  ;;  %v1114_v51 = vsel %vm565_vm1, %v1109_v36, %v1113_v37  ;;  %v3696_v57 = vld [vmem:[%s3527_s23 + $0x38] ss:$0 sps:$4 sm:$0x11]   ;;  %v617_v60 = vshll.u32 %v3688_v50, 16  ;;  %v1620_v63 = vrot.slane %v1618_v47, 1  ;;  %v1623_v0 = vshll.u32 %v3355_v49, 16 }
  0x35   : > { %v3137_v3 = vcombine.low %v2993_v59, %v2948_v27  ;;  %v1637_v5 = vrot.slane %v1635_v56, 1  ;;  %v622_v6 = vshll.u32 %v3696_v57, 16  ;;  %v615_v7 = vshrl.u32 %v3688_v50, 16  ;;  %v2890_v26 = vld [vmem:[%s3527_s23 + $0x4c] sm:$0xf] }
  0x36   : > { %764 = vrot.lane.b32.xlu1 %v613_v4, %s3478_s29  ;;  %v1633_v4 = vor.u32 %v1632_v55, %v1628_v54  ;;  %v629_v9 = vshll.u32 %v3702_v61, 16  ;;  %v1621_v10 = vor.u32 %v1620_v63, %v1616_v62  ;;  %v1625_v11 = vrot.slane %v1623_v0, 1  ;;  %v295_v27 = vld [vmem:[%s3527_s23 + $0x30] sm:$0xe]  ;;  %v2887_v28 = vld [vmem:[%s3527_s23 + $0x3c] sm:$0xf] }
  0x37   : > { %v624_v14 = vrot.slane %v622_v6, 1  ;;  %v1869_v15 = vrot.slane %v3137_v3, 1  ;;  %v627_v20 = vshrl.u32 %v3702_v61, 16  ;;  %v2888_v30 = vld [vmem:[%s3527_s23 + $0x40] sm:$0xf]  ;;  %v3044_v33 = vcombine.low %v296_v24, %v254_v53 }
  0x38   : > { %1913 = vrot.lane.b32.xlu0 %v1868_v2, %s3482_s10  ;;  %v619_v2 = vrot.slane %v617_v60, 1  ;;  %v1638_v13 = vsel %vm565_vm1, %v1633_v4, %v1637_v5  ;;  %v631_v21 = vrot.slane %v629_v9, 1  ;;  %v1626_v25 = vsel %vm565_vm1, %v1621_v10, %v1625_v11  ;;  %v3367_v53 = vld [vmem:[%s3527_s23 + $0x44] ss:$0 sps:$4 sm:$0x11]  }
  0x39   : > { %v1873_v40 = vrot.slane %v3682_v45, 1  ;;  %v3043_v41 = vcombine.low %v295_v27, %v3677_v39  ;;  %v854_v44 = vrot.slane %v3044_v33, 1  ;;  %v852_v52 = vrot.slane %v3696_v57, 1  ;;  %v2953_v54 = vld [vmem:[%s3527_s23 + $0x54] sm:$0xf] }
  0x3a   : > { %893 = vrot.lane.b32.xlu1 %v850_v16, %s3477_s26  ;;  %v1870_v16 = vrot.slane %v3355_v49, 1  ;;  %v620_v17 = vor.u32 %v619_v2, %v615_v7  ;;  %v3366_v49 = vld [vmem:[%s3527_s23 + $0x50] ss:$0 sps:$4 sm:$0x11]   ;;  %v3740_v55 = vld [vmem:[%s3527_s23 + $0x58] sm:$0xf] }
  0x3b   : > { %v851_v45 = vrot.slane %v3043_v41, 1  ;;  %v2931_v62 = vld [vmem:[%s3527_s23 + $0x3c] sm:$0xe]  ;;  %v3108_v3 = vcombine.low %v2953_v54, %v3740_v55  ;;  %v2951_v4 = vld [vmem:[%s3527_s23 + $0x48] sm:$0xf] }
  0x3c   : > { %891 = vrot.lane.b32.xlu0 %v847_v19, %s3477_s26  ;;  %v634_v19 = vshll.u32 %v3359_v8, 16  ;;  %v625_v34 = vsel %vm565_vm1, %v620_v17, %v624_v14  ;;  %v1871_v38 = vsel %vm838_vm0, %v1869_v15, %v1870_v16  ;;  %v3750_v5 = vld [vmem:[%s3527_s23 + $0x4c] sm:$0xf]  ;;  %v3091_v7 = vcombine.low %v2931_v62, %v2888_v30  ;;  %v255_v9 = vld [vmem:[%s3527_s23 + $0x48] sm:$0xf] }
  0x3d   : > { %v853_v57 = vsel %vm838_vm0, %v851_v45, %v852_v52  ;;  %v3756_v10 = vld [vmem:[%s3527_s23 + $0x4c] sm:$0xf]  ;;  %v1654_v14 = vshll.u32 %v3108_v3, 16  ;;  %v1367_v16 = vrot.slane %v3366_v49, 1  ;;  %v257_v27 = vld [vmem:[%s3527_s23 + $0x54] sm:$0xf] }
  0x3e   : > { %1005 = vrot.lane.b32.xlu1 %v3058_v48, %s3475_s24  ;;  %v1359_v48 = vsel %vm838_vm0, %v1357_v42, %v1358_v43  ;;  %v636_v36 = vrot.slane %v634_v19, 1  ;;  %v3059_v42 = vcombine.low %v2887_v28, %v2888_v30  ;;  %v3761_v17 = vld [vmem:[%s3527_s23 + $0x5c] ss:$0 sps:$4 sm:$0x11]   ;;  %v1363_v19 = vrot.slane %v3091_v7, 1 }
  0x3f   : > { %v3769_v24 = vld [vmem:[%s3527_s23 + $0x50] ss:$0 sps:$4 sm:$0x11]   ;;  %v3774_v28 = vld [vmem:[%s3527_s23 + $0x58] sm:$0xf]  ;;  %v1652_v30 = vshrl.u32 %v3108_v3, 16 }
  0x40   : > { %1003 = vrot.lane.b32.xlu0 %v3057_v1, %s3475_s24  ;;  %v2994_v1 = vld [vmem:[%s3527_s23 + $0x3c] sm:$0xe]  ;;  %v1130_v39 = vshll.u32 %v3059_v42, 16  ;;  %v1128_v63 = vshrl.u32 %v3059_v42, 16  ;;  %v1659_v33 = vshll.u32 %v3761_v17, 16 }
  0x41   : > { %v3138_v12 = vcombine.low %v2994_v1, %v3667_v22  ;;  %v2889_v22 = vld [vmem:[%s3527_s23 + $0x48] sm:$0xf]  ;;  %v1135_v1 = vshll.u32 %v3367_v53, 16  ;;  %v3377_v52 = vld [vmem:[%s3527_s23 + $0x5c] ss:$0 sps:$4 sm:$0x11]  }
  0x42   : > { %1277 = vrot.lane.b32.xlu1 %v1126_v46, %s3479_s7  ;;  %v3060_v37 = vcombine.low %v2889_v22, %v2890_v26  ;;  %v855_v46 = vrot.slane %v3359_v8, 1  ;;  %v1132_v0 = vrot.slane %v1130_v39, 1  ;;  %v1364_v22 = vrot.slane %v3367_v53, 1  ;;  %v2893_v62 = vld [vmem:[%s3527_s23 + $0x60] sm:$0xf] }
  0x43   : > { %v297_v7 = vld [vmem:[%s3527_s23 + $0x48] sm:$0xe] }
  0x44   : > { %1275 = vrot.lane.b32.xlu0 %v1114_v51, %s3479_s7  ;;  %v1142_v47 = vshll.u32 %v3060_v37, 16  ;;  %v856_v56 = vsel %vm838_vm0, %v854_v44, %v855_v46  ;;  %v1140_v59 = vshrl.u32 %v3060_v37, 16  ;;  %v1133_v11 = vor.u32 %v1132_v0, %v1128_v63  ;;  %v2995_v44 = vld [vmem:[%s3527_s23 + $0x48] sm:$0xe] }
  0x45   : > { %v3139_v53 = vcombine.low %v2995_v44, %v3750_v5 }
  0x46   : > { %1405 = vrot.lane.b32.xlu1 %v1362_v58, %s3476_s25  ;;  %v2932_v58 = vld [vmem:[%s3527_s23 + $0x48] sm:$0xe]  ;;  %v1144_v60 = vrot.slane %v1142_v47, 1  ;;  %v1661_v47 = vrot.slane %v1659_v33, 1 }
  0x47   : > { %v3092_v6 = vcombine.low %v2932_v58, %v2890_v26  ;;  %v3406_v58 = vld [vmem:[%s4758_s1 + $0x10] ss:$0 sps:$4 sm:$0x33]  }
  0x48   : > { %1403 = vrot.lane.b32.xlu0 %v1359_v48, %s3476_s25  ;;  %v1147_v48 = vshll.u32 %v3366_v49, 16  ;;  %v1145_v2 = vor.u32 %v1144_v60, %v1140_v59  ;;  %3301 = vmatprep.subr.msk.bf16.mxu0 %vm2267_vm2, %v3406_v58 }
  0x49   : > { %v1366_v15 = vrot.slane %v3092_v6, 1  ;;  %v1876_v6 = vrot.slane %v3769_v24, 1  ;;  %3302 = vmatprep.subr.msk.bf16.mxu1 %vm2267_vm2, %v3406_v58 }
  0x4a   : > { %1517 = vrot.lane.b32.xlu1 %v3106_v31, %s3480_s8  ;;  %v1872_v31 = vrot.slane %v3138_v12, 1  ;;  %v1149_v8 = vrot.slane %v1147_v48, 1  ;;  %v1137_v12 = vrot.slane %v1135_v1, 1 }
  0x4c   : > { %1515 = vrot.lane.b32.xlu0 %v3105_v35, %s3480_s8  ;;  %v632_v35 = vor.u32 %v631_v21, %v627_v20  ;;  %v1874_v51 = vsel %vm838_vm0, %v1872_v31, %v1873_v40  ;;  %v3764_v20 = vcombine.low %v255_v9, %v3756_v10  ;;  %v1150_v21 = vsel %vm565_vm1, %v1145_v2, %v1149_v8  ;;  %v2891_v2 = vld [vmem:[%s3527_s23 + $0x54] sm:$0xf]  ;;  %v3816_v8 = vld [vmem:[%s3527_s23 + $0x58] sm:$0xf] }
  0x4d   : > { %v1656_v31 = vrot.slane %v1654_v14, 1  ;;  %v2269_v9 = vsel %vm2267_vm2, %v3406_v58, 0 }
  0x4e   : > { %1789 = vrot.lane.b32.xlu1 %v1638_v13, %s3481_s9  ;;  %v637_v43 = vsel %vm565_vm1, %v632_v35, %v636_v36  ;;  %v3107_v13 = vcombine.low %v2951_v4, %v3750_v5  ;;  %v641_v35 = vshll.u32 %v3764_v20, 16  ;;  %v1368_v36 = vsel %vm838_vm0, %v1366_v15, %v1367_v16  ;;  %v3809_v5 = vld [vmem:[%s3527_s23 + $0x64] sm:$0xf]  ;;  %3262 = vmatpush3.bf16.msra.mxu0 %v2269_v9 }
  0x4f   : > { %v1657_v46 = vor.u32 %v1656_v31, %v1652_v30  ;;  %v639_v49 = vshrl.u32 %v3764_v20, 16  ;;  %v658_v4 = vshll.u32 %v3377_v52, 16  ;;  %3300 = vmatpush3.bf16.msra.mxu1 %v2269_v9  ;;  %v3384_v30 = vld [vmem:[%s3527_s23 + $0x68] ss:$0 sps:$4 sm:$0x11]  }
  0x50   : > { %1787 = vrot.lane.b32.xlu0 %v1626_v25, %s3481_s9  ;;  %v1138_v25 = vsel %vm565_vm1, %v1133_v11, %v1137_v12  ;;  %v1642_v26 = vshll.u32 %v3107_v13, 16  ;;  %v1640_v40 = vshrl.u32 %v3107_v13, 16  ;;  %v3062_v12 = vcombine.low %v2893_v62, %v3809_v5  ;;  %v3385_v31 = vld [vmem:[%s3527_s23 + $0x5c] ss:$0 sps:$4 sm:$0x11]  }
  0x51   : > { %v1662_v60 = vsel %vm565_vm1, %v1657_v46, %v1661_v47  ;;  %v660_v15 = vrot.slane %v658_v4, 1  ;;  %v1171_v44 = vshll.u32 %v3384_v30, 16  ;;  %v1159_v46 = vshll.u32 %v3385_v31, 16  ;;  %v3853_v62 = vld [vmem:[%s3527_s23 + $0x64] sm:$0xf] }
  0x52   : > { %766 = vrot.lane.b32.xlu1 %v625_v34, %s3478_s29  ;;  %v3779_v34 = vld [vmem:[%s3527_s23 + $0x50] ss:$0 sps:$4 sm:$0x11]   ;;  %v1644_v41 = vrot.slane %v1642_v26, 1  ;;  %v861_v26 = vrot.slane %v3377_v52, 1 }
  0x53   : > { %v646_v45 = vshll.u32 %v3779_v34, 16  ;;  %v858_v33 = vrot.slane %v3779_v34, 1  ;;  %v2933_v34 = vld [vmem:[%s3527_s23 + $0x54] sm:$0xe]  ;;  %v2955_v52 = vld [vmem:[%s3527_s23 + $0x60] sm:$0xf] }
  0x54   : > { %1915 = vrot.lane.b32.xlu0 %v1871_v38, %s3482_s10  ;;  %v1365_v38 = vsel %vm838_vm0, %v1363_v19, %v1364_v22  ;;  %v1645_v54 = vor.u32 %v1644_v41, %v1640_v40  ;;  %v1879_v19 = vrot.slane %v3761_v17, 1  ;;  %v3838_v40 = vld [vmem:[%s3527_s23 + $0x70] sm:$0xf]  ;;  %v2934_v41 = vld [vmem:[%s3527_s23 + $0x60] sm:$0xe]  ;;  %v1173_v58 = vrot.slane %v1171_v44, 1 }
  0x55   : > { %v648_v48 = vrot.slane %v646_v45, 1  ;;  %v261_v9 = vld [vmem:[%s3527_s23 + $0x6c] sm:$0xf] }
  0x56   : > { %768 = vrot.lane.b32.xlu1 %v637_v43, %s3478_s29  ;;  %v2996_v43 = vld [vmem:[%s3527_s23 + $0x54] sm:$0xe]  ;;  %v2998_v44 = vld [vmem:[%s3527_s23 + $0x6c] sm:$0xe] }
  0x57   : > { %v3140_v59 = vcombine.low %v2996_v43, %v3740_v55 }
  0x58   : > { %1917 = vrot.lane.b32.xlu0 %v1874_v51, %s3482_s10  ;;  %v643_v51 = vrot.slane %v641_v35, 1 }
  0x59   : > { %v1878_v16 = vrot.slane %v3140_v59, 1  ;;  %v1161_v59 = vrot.slane %v1159_v46, 1 }
  0x5a   : > { %897 = vrot.lane.b32.xlu1 %v856_v56, %s3477_s26  ;;  %v644_v63 = vor.u32 %v643_v51, %v639_v49 }
  0x5c   : > { %895 = vrot.lane.b32.xlu0 %v853_v57, %s3477_s26  ;;  %v298_v57 = vld [vmem:[%s3527_s23 + $0x54] sm:$0xe] }
  0x5d   : > { %v3046_v11 = vcombine.low %v298_v57, %v3774_v28  ;;  %v259_v57 = vld [vmem:[%s3527_s23 + $0x60] sm:$0xf] }
  0x5e   : > { %1009 = vrot.lane.b32.xlu1 %v3060_v37, %s3475_s24  ;;  %v3785_v37 = vcombine.low %v257_v27, %v3774_v28  ;;  %v1166_v27 = vshll.u32 %v3062_v12, 16 }
  0x5f   : > { %v860_v22 = vrot.slane %v3046_v11, 1  ;;  %v3868_v11 = vld [vmem:[%s3527_s23 + $0x70] sm:$0xf] }
  0x60   : > { %1007 = vrot.lane.b32.xlu0 %v3059_v42, %s3475_s24  ;;  %v1647_v42 = vshll.u32 %v3769_v24, 16  ;;  %v653_v39 = vshll.u32 %v3785_v37, 16  ;;  %v651_v0 = vshrl.u32 %v3785_v37, 16  ;;  %v3045_v24 = vcombine.low %v297_v7, %v3756_v10 }
  0x61   : > { %v1880_v10 = vsel %vm838_vm0, %v1878_v16, %v1879_v19  ;;  %v1168_v43 = vrot.slane %v1166_v27, 1 }
  0x62   : > { %1281 = vrot.lane.b32.xlu1 %v1150_v21, %s3479_s7  ;;  %v1649_v56 = vrot.slane %v1647_v42, 1  ;;  %v655_v1 = vrot.slane %v653_v39, 1  ;;  %v857_v17 = vrot.slane %v3045_v24, 1  ;;  %v1164_v42 = vshrl.u32 %v3062_v12, 16  ;;  %v2956_v39 = vld [vmem:[%s3527_s23 + $0x64] sm:$0xf] }
  0x63   : > { %v3880_v24 = vcombine.low %v261_v9, %v3868_v11 }
  0x64   : > { %1279 = vrot.lane.b32.xlu0 %v1138_v25, %s3479_s7  ;;  %v1650_v55 = vsel %vm565_vm1, %v1645_v54, %v1649_v56  ;;  %v656_v14 = vor.u32 %v655_v1, %v651_v0  ;;  %v3061_v25 = vcombine.low %v2891_v2, %v3816_v8  ;;  %v859_v47 = vsel %vm838_vm0, %v857_v17, %v858_v33  ;;  %v3857_v1 = vld [vmem:[%s3527_s23 + $0x74] ss:$0 sps:$4 sm:$0x11]  }
  0x65   : > { %v3093_v54 = vcombine.low %v2933_v34, %v3816_v8  ;;  %v1169_v56 = vor.u32 %v1168_v43, %v1164_v42  ;;  %v1370_v2 = vrot.slane %v3385_v31, 1  ;;  %v1885_v9 = vrot.slane %v3857_v1, 1 }
  0x66   : > { %1409 = vrot.lane.b32.xlu1 %v1368_v36, %s3476_s25  ;;  %v661_v28 = vsel %vm565_vm1, %v656_v14, %v660_v15  ;;  %v1154_v35 = vshll.u32 %v3061_v25, 16  ;;  %v862_v36 = vsel %vm838_vm0, %v860_v22, %v861_v26  ;;  %v1152_v49 = vshrl.u32 %v3061_v25, 16  ;;  %v3873_v15 = vld [vmem:[%s3527_s23 + $0x68] ss:$0 sps:$4 sm:$0x11]  }
  0x67   : > { %v1174_v4 = vsel %vm565_vm1, %v1169_v56, %v1173_v58  ;;  %v1683_v14 = vshll.u32 %v3857_v1, 16  ;;  %v670_v33 = vshll.u32 %v3873_v15, 16  ;;  %v3142_v58 = vcombine.low %v2998_v44, %v3838_v40 }
  0x68   : > { %1407 = vrot.lane.b32.xlu0 %v1365_v38, %s3476_s25  ;;  %v2957_v38 = vld [vmem:[%s3527_s23 + $0x6c] sm:$0xf]  ;;  %v1156_v51 = vrot.slane %v1154_v35, 1 }
  0x69   : > { %v3110_v45 = vcombine.low %v2957_v38, %v3838_v40  ;;  %v1685_v17 = vrot.slane %v1683_v14, 1  ;;  %v3395_v38 = vld [vmem:[%s3527_s23 + $0x74] ss:$0 sps:$4 sm:$0x11]  }
  0x6a   : > { %1521 = vrot.lane.b32.xlu1 %v3108_v3, %s3480_s8  ;;  %v1875_v3 = vrot.slane %v3139_v53, 1  ;;  %v3094_v53 = vcombine.low %v2934_v41, %v3809_v5  ;;  %v1373_v5 = vrot.slane %v3384_v30, 1  ;;  %v677_v41 = vshll.u32 %v3880_v24, 16 }
  0x6b   : > { %v682_v56 = vshll.u32 %v3395_v38, 16  ;;  %v867_v14 = vrot.slane %v3395_v38, 1 }
  0x6c   : > { %1519 = vrot.lane.b32.xlu0 %v3107_v13, %s3480_s8  ;;  %v649_v13 = vsel %vm565_vm1, %v644_v63, %v648_v48  ;;  %v1877_v21 = vsel %vm838_vm0, %v1875_v3, %v1876_v6  ;;  %v3109_v48 = vcombine.low %v2955_v52, %v2956_v39  ;;  %v1678_v63 = vshll.u32 %v3110_v45, 16  ;;  %v3391_v3 = vld [vmem:[%s3527_s23 + $0x68] ss:$0 sps:$4 sm:$0x11]  }
  0x6d   : > { %v1372_v0 = vrot.slane %v3094_v53, 1  ;;  %v3863_v6 = vcombine.low %v259_v57, %v3853_v62  ;;  %v1671_v27 = vshll.u32 %v3391_v3, 16  ;;  %v675_v53 = vshrl.u32 %v3880_v24, 16  ;;  %v2897_v57 = vld [vmem:[%s3527_s23 + $0x78] sm:$0xf] }
  0x6e   : > { %1793 = vrot.lane.b32.xlu1 %v1662_v60, %s3481_s9  ;;  %v1157_v60 = vor.u32 %v1156_v51, %v1152_v49  ;;  %v1666_v8 = vshll.u32 %v3109_v48, 16  ;;  %v1664_v22 = vshrl.u32 %v3109_v48, 16  ;;  %v1882_v49 = vrot.slane %v3391_v3, 1  ;;  %v300_v51 = vld [vmem:[%s3527_s23 + $0x6c] sm:$0xe] }
  0x6f   : > { %v1374_v16 = vsel %vm838_vm0, %v1372_v0, %v1373_v5  ;;  %v665_v19 = vshll.u32 %v3863_v6, 16  ;;  %v663_v35 = vshrl.u32 %v3863_v6, 16  ;;  %v1673_v43 = vrot.slane %v1671_v27, 1  ;;  %v2895_v0 = vld [vmem:[%s3527_s23 + $0x6c] sm:$0xf] }
  0x70   : > { %1791 = vrot.lane.b32.xlu0 %v1650_v55, %s3481_s9  ;;  %v1369_v55 = vrot.slane %v3093_v54, 1  ;;  %v1162_v7 = vsel %vm565_vm1, %v1157_v60, %v1161_v59  ;;  %v1668_v26 = vrot.slane %v1666_v8, 1  ;;  %v679_v54 = vrot.slane %v677_v41, 1 }
  0x71   : > { %v3048_v5 = vcombine.low %v300_v51, %v3868_v11  ;;  %v684_v3 = vrot.slane %v682_v56, 1  ;;  %v1884_v8 = vrot.slane %v3142_v58, 1  ;;  %v3962_v51 = vld [vmem:[%s3527_s23 + $0x7c] sm:$0xf] }
  0x72   : > { %770 = vrot.lane.b32.xlu1 %v649_v13, %s3478_s29  ;;  %v1680_v13 = vrot.slane %v1678_v63, 1  ;;  %v1669_v42 = vor.u32 %v1668_v26, %v1664_v22  ;;  %v3908_v63 = vld [vmem:[%s3527_s23 + $0x7c] sm:$0xf]  ;;  %v864_v26 = vrot.slane %v3873_v15, 1 }
  0x74   : > { %1919 = vrot.lane.b32.xlu0 %v1877_v21, %s3482_s10  ;;  %v2997_v21 = vld [vmem:[%s3527_s23 + $0x60] sm:$0xe]  ;;  %v1674_v60 = vsel %vm565_vm1, %v1669_v42, %v1673_v43  ;;  %v2961_v42 = vld [vmem:[%s3527_s23 + $0x84] sm:$0xf]  ;;  %v3954_v43 = vld [vmem:[%s3527_s23 + $0x88] sm:$0xf] }
  0x75   : > { %v3141_v31 = vcombine.low %v2997_v21, %v2956_v39 }
  0x76   : > { %772 = vrot.lane.b32.xlu1 %v661_v28, %s3478_s29 }
  0x77   : > { %v1881_v34 = vrot.slane %v3141_v31, 1  ;;  %v3942_v31 = vld [vmem:[%s3527_s23 + $0x74] ss:$0 sps:$4 sm:$0x11]  }
  0x78   : > { %1921 = vrot.lane.b32.xlu0 %v1880_v10, %s3482_s10 }
  0x7a   : > { %901 = vrot.lane.b32.xlu1 %v862_v36, %s3477_s26  ;;  %v667_v36 = vrot.slane %v665_v19, 1  ;;  %v866_v19 = vrot.slane %v3048_v5, 1  ;;  %v263_v5 = vld [vmem:[%s3527_s23 + $0x78] sm:$0xf] }
  0x7c   : > { %899 = vrot.lane.b32.xlu0 %v859_v47, %s3477_s26  ;;  %v672_v47 = vrot.slane %v670_v33, 1  ;;  %v668_v39 = vor.u32 %v667_v36, %v663_v35  ;;  %v2935_v33 = vld [vmem:[%s3527_s23 + $0x6c] sm:$0xe]  ;;  %v868_v15 = vsel %vm838_vm0, %v866_v19, %v867_v14 }
  0x7e   : > { %1013 = vrot.lane.b32.xlu1 %v3062_v12, %s3475_s24  ;;  %v1676_v12 = vshrl.u32 %v3110_v45, 16  ;;  %v673_v40 = vsel %vm565_vm1, %v668_v39, %v672_v47 }
  0x80   : > { %1011 = vrot.lane.b32.xlu0 %v3061_v25, %s3475_s24  ;;  %v1371_v25 = vsel %vm838_vm0, %v1369_v55, %v1370_v2  ;;  %v1681_v10 = vor.u32 %v1680_v13, %v1676_v12  ;;  %v680_v55 = vor.u32 %v679_v54, %v675_v53 }
  0x82   : > { %1285 = vrot.lane.b32.xlu1 %v1174_v4, %s3479_s7  ;;  %v1686_v46 = vsel %vm565_vm1, %v1681_v10, %v1685_v17  ;;  %v3912_v4 = vld [vmem:[%s3527_s23 + $0x70] sm:$0xf]  ;;  %v685_v21 = vsel %vm565_vm1, %v680_v55, %v684_v3  ;;  %v2936_v17 = vld [vmem:[%s3527_s23 + $0x78] sm:$0xe] }
  0x83   : > { %v3927_v13 = vcombine.low %v2895_v0, %v3912_v4  ;;  %v3096_v54 = vcombine.low %v2936_v17, %v3908_v63  ;;  %v3095_v56 = vcombine.low %v2935_v33, %v3912_v4 }
  0x84   : > { %1283 = vrot.lane.b32.xlu0 %v1162_v7, %s3479_s7  ;;  %v3920_v7 = vcombine.low %v2897_v57, %v3908_v63 }
  0x85   : > { %v1178_v27 = vshll.u32 %v3927_v13, 16  ;;  %v1176_v41 = vshrl.u32 %v3927_v13, 16  ;;  %v1378_v55 = vrot.slane %v3096_v54, 1  ;;  %v3000_v54 = vld [vmem:[%s3527_s23 + $0x84] sm:$0xe] }
  0x86   : > { %1413 = vrot.lane.b32.xlu1 %v1374_v16, %s3476_s25  ;;  %v3884_v28 = vpop.permute.xlu1 %1001  ;;  %v3931_v16 = vld [vmem:[%s3527_s23 + $0x80] ss:$0 sps:$4 sm:$0x11]   ;;  %v1190_v1 = vshll.u32 %v3920_v7, 16  ;;  %v1188_v35 = vshrl.u32 %v3920_v7, 16 }
  0x87   : > { %v3886_v30 = vpop.permute.xlu0 %999  ;;  %v1195_v36 = vshll.u32 %v3931_v16, 16  ;;  %v1180_v47 = vrot.slane %v1178_v27, 1  ;;  %v1379_v3 = vrot.slane %v3931_v16, 1 }
  0x88   : > { %1411 = vrot.lane.b32.xlu0 %v1371_v25, %s3476_s25  ;;  %v1192_v38 = vrot.slane %v1190_v1, 1 }
  0x89   : > { %v1181_v4 = vor.u32 %v1180_v47, %v1176_v41  ;;  %v1380_v27 = vsel %vm838_vm0, %v1378_v55, %v1379_v3 }
  0x8a   : > { %1525 = vrot.lane.b32.xlu1 %v3110_v45, %s3480_s8  ;;  %v299_v45 = vld [vmem:[%s3527_s23 + $0x60] sm:$0xe] }
  0x8b   : > { %v3898_v52 = vpop.permute.xlu0 %1399  ;;  %v3047_v12 = vcombine.low %v299_v45, %v3853_v62  ;;  %v1886_v62 = vsel %vm838_vm0, %v1884_v8, %v1885_v9  ;;  %v3970_v45 = vcombine.low %v2961_v42, %v3954_v43  ;;  %v1375_v8 = vrot.slane %v3095_v56, 1 }
  0x8c   : > { %1523 = vrot.lane.b32.xlu0 %v3109_v48, %s3480_s8  ;;  %v3903_v59 = vpop.permute.xlu1 %887  ;;  %v1883_v48 = vsel %vm838_vm0, %v1881_v34, %v1882_v49  ;;  %v1183_v34 = vshll.u32 %v3942_v31, 16  ;;  %v2959_v49 = vld [vmem:[%s3527_s23 + $0x78] sm:$0xf]  ;;  %v1376_v9 = vrot.slane %v3942_v31, 1 }
  0x8d   : > { %v863_v22 = vrot.slane %v3047_v12, 1  ;;  %v3976_v57 = vcombine.low %v2959_v49, %v3962_v51  ;;  %v1702_v12 = vshll.u32 %v3970_v45, 16 }
  0x8e   : > { %1797 = vrot.lane.b32.xlu1 %v1686_v46, %s3481_s9  ;;  %v1377_v31 = vsel %vm838_vm0, %v1375_v8, %v1376_v9 }
  0x8f   : > { %v865_v46 = vsel %vm838_vm0, %v863_v22, %v864_v26  ;;  %v265_v22 = vld [vmem:[%s3527_s23 + $0x84] sm:$0xf]  ;;  %v1704_v17 = vrot.slane %v1702_v12, 1  ;;  %v3144_v12 = vcombine.low %v3000_v54, %v3954_v43  ;;  %v3423_v54 = vld [vmem:[%s3527_s23 + $0x98] ss:$0 sps:$4 sm:$0x11]  }
  0x90   : > { %1795 = vrot.lane.b32.xlu0 %v1674_v60, %s3481_s9  ;;  %v3922_v2 = vpop.permute.xlu1 %889  ;;  %v1197_v60 = vrot.slane %v1195_v36, 1  ;;  %v1688_v36 = vshrl.u32 %v3976_v57, 16 }
  0x92   : > { %v759_v11 = vpop.permute.xlu0 %758  ;;  %774 = vrot.lane.b32.xlu1 %v673_v40, %s3478_s29  ;;  %v3984_v40 = vld [vmem:[%s3527_s23 + $0x7c] sm:$0xf] }
  0x93   : > { %v1945_v39 = vsel %vm1943_vm3, %v3555_v23, %v759_v11  ;;  %v1193_v23 = vor.u32 %v1192_v38, %v1188_v35  ;;  %v3994_v11 = vld [vmem:[%s3527_s23 + $0x8c] ss:$0 sps:$4 sm:$0x11]   ;;  %v4022_v35 = vld [vmem:[%s3527_s23 + $0x80] ss:$0 sps:$4 sm:$0x11]  }
  0x94   : > { %1923 = vrot.lane.b32.xlu0 %v1883_v48, %s3482_s10  ;;  %v3936_v25 = vpop.permute.xlu1 %1401  ;;  %v1978_v63 = vsel %vm1976_vm4, %v1945_v39, %v3903_v59  ;;  %v1185_v48 = vrot.slane %v1183_v34, 1  ;;  %v1707_v33 = vshll.u32 %v3994_v11, 16  ;;  %v2999_v39 = vld [vmem:[%s3527_s23 + $0x78] sm:$0xe] }
  0x95   : > { %v2011_v14 = vsel %vm2009_vm5, %v1978_v63, %v3886_v30  ;;  %v1198_v16 = vsel %vm565_vm1, %v1193_v23, %v1197_v60  ;;  %v4012_v30 = vld [vmem:[%s3527_s23 + $0x88] sm:$0xf]  ;;  %v3143_v55 = vcombine.low %v2999_v39, %v3962_v51 }
  0x96   : > { %v761_v10 = vpop.permute.xlu0 %760  ;;  %776 = vrot.lane.b32.xlu1 %v685_v21, %s3478_s29  ;;  %v4003_v21 = vld [vmem:[%s3527_s23 + $0x80] ss:$0 sps:$4 sm:$0x11]   ;;  %v4030_v38 = vcombine.low %v265_v22, %v4012_v30 }
  0x97   : > { %v1947_v58 = vsel %vm1943_vm3, %v3560_v29, %v761_v10  ;;  %v1700_v10 = vshrl.u32 %v3970_v45, 16  ;;  %v1888_v22 = vrot.slane %v4003_v21, 1 }
  0x98   : > { %1925 = vrot.lane.b32.xlu0 %v1886_v62, %s3482_s10  ;;  %v3956_v44 = vpop.permute.xlu1 %1273  ;;  %v1980_v59 = vsel %vm1976_vm4, %v1947_v58, %v3922_v2  ;;  %v1690_v2 = vshll.u32 %v3976_v57, 16  ;;  %v1186_v62 = vsel %vm565_vm1, %v1181_v4, %v1185_v48  ;;  %v1709_v58 = vrot.slane %v1707_v33, 1  ;;  %v4050_v4 = vld [vmem:[%s3527_s23 + $0x8c] ss:$0 sps:$4 sm:$0x11]  }
  0x99   : > { %v1705_v56 = vor.u32 %v1704_v17, %v1700_v10  ;;  %v701_v48 = vshll.u32 %v4030_v38, 16  ;;  %v706_v43 = vshll.u32 %v4050_v4, 16  ;;  %v4083_v10 = vld [vmem:[%s3527_s23 + $0x88] sm:$0xf]  ;;  %v1890_v17 = vrot.slane %v3144_v12, 1 }
  0x9a   : > { %v1272_v53 = vpop.permute.xlu0 %1271  ;;  %905 = vrot.lane.b32.xlu1 %v868_v15, %s3477_s26  ;;  %v1692_v47 = vrot.slane %v1690_v2, 1 }
  0x9b   : > { %v2044_v19 = vsel %vm2042_vm6, %v2011_v14, %v1272_v53  ;;  %v703_v2 = vrot.slane %v701_v48, 1  ;;  %v2938_v48 = vld [vmem:[%s3527_s23 + $0x90] sm:$0xe] }
  0x9c   : > { %903 = vrot.lane.b32.xlu0 %v865_v46, %s3477_s26  ;;  %v3980_v0 = vpop.permute.xlu1 %1513 }
  0x9e   : > { %v1512_v29 = vpop.permute.xlu0 %1511  ;;  %1017 = vrot.lane.b32.xlu1 %v3920_v7, %s3475_s24  ;;  %v4006_v7 = vcombine.low %v263_v5, %v3984_v40 }
  0xa0   : > { %1015 = vrot.lane.b32.xlu0 %v3927_v13, %s3475_s24  ;;  %v1786_v1 = vpop.permute.xlu1 %1785  ;;  %v2013_v13 = vsel %vm2009_vm5, %v1980_v59, %v3884_v28  ;;  %v2077_v28 = vsel %vm2075_vm7, %v2044_v19, %v3898_v52  ;;  %v689_v15 = vshll.u32 %v4006_v7, 16  ;;  %v1695_v52 = vshll.u32 %v4003_v21, 16  ;;  %v302_v19 = vld [vmem:[%s3527_s23 + $0x84] sm:$0xe] }
  0xa1   : > { %v2046_v41 = vsel %vm2042_vm6, %v2013_v13, %v3956_v44  ;;  %v2110_v42 = vsel %vm2108_vm8, %v2077_v28, %v1512_v29  ;;  %v694_v44 = vshll.u32 %v4022_v35, 16  ;;  %v687_v60 = vshrl.u32 %v4006_v7, 16  ;;  %v2901_v13 = vld [vmem:[%s3527_s23 + $0x90] sm:$0xf] }
  0xa2   : > { %v1784_v26 = vpop.permute.xlu0 %1783  ;;  %1289 = vrot.lane.b32.xlu1 %v1198_v16, %s3479_s7  ;;  %v2079_v23 = vsel %vm2075_vm7, %v2046_v41, %v3936_v25  ;;  %v691_v63 = vrot.slane %v689_v15, 1  ;;  %v1693_v25 = vor.u32 %v1692_v47, %v1688_v36  ;;  %v1697_v3 = vrot.slane %v1695_v52, 1 }
  0xa3   : > { %v2143_v34 = vsel %vm2141_vm9, %v2110_v42, %v1784_v26  ;;  %v2112_v5 = vsel %vm2108_vm8, %v2079_v23, %v3980_v0  ;;  %v1710_v0 = vsel %vm565_vm1, %v1705_v56, %v1709_v58  ;;  %v696_v14 = vrot.slane %v694_v44, 1  ;;  %v4076_v26 = vld [vmem:[%s3527_s23 + $0x94] sm:$0xf] }
  0xa4   : > { %1287 = vrot.lane.b32.xlu0 %v1186_v62, %s3479_s7  ;;  %v4035_v46 = vpop.permute.xlu1 %762  ;;  %v2145_v59 = vsel %vm2141_vm9, %v2112_v5, %v1786_v1  ;;  %v692_v51 = vor.u32 %v691_v63, %v687_v60  ;;  %v699_v16 = vshrl.u32 %v4030_v38, 16  ;;  %v1887_v62 = vrot.slane %v3143_v55, 1  ;;  %v3424_v60 = vld [vmem:[%s3527_s23 + $0x8c] ss:$0 sps:$4 sm:$0x11]  }
  0xa5   : > { %v3050_v33 = vcombine.low %v302_v19, %v4012_v30  ;;  %v708_v36 = vrot.slane %v706_v43, 1  ;;  %v3066_v15 = vcombine.low %v2901_v13, %v4076_v26  ;;  %v1891_v47 = vrot.slane %v3994_v11, 1  ;;  %v2965_v5 = vld [vmem:[%s3527_s23 + $0x9c] sm:$0xf]  ;;  %v4112_v55 = vld [vmem:[%s3527_s23 + $0xa0] sm:$0xf] }
  0xa6   : > { %v1912_v49 = vpop.permute.xlu0 %1911  ;;  %1417 = vrot.lane.b32.xlu1 %v1380_v27, %s3476_s25  ;;  %v301_v27 = vld [vmem:[%s3527_s23 + $0x78] sm:$0xe]  ;;  %v697_v28 = vsel %vm565_vm1, %v692_v51, %v696_v14  ;;  %v704_v21 = vor.u32 %v703_v2, %v699_v16  ;;  %v1889_v42 = vsel %vm838_vm0, %v1887_v62, %v1888_v22  ;;  %v870_v44 = vrot.slane %v4022_v35, 1  ;;  %v2963_v43 = vld [vmem:[%s3527_s23 + $0x90] sm:$0xf] }
  0xa7   : > { %v2176_v53 = vsel %vm2174_vm10, %v2143_v34, %v1912_v49  ;;  %v3049_v52 = vcombine.low %v301_v27, %v3984_v40  ;;  %v872_v39 = vrot.slane %v3050_v33, 1  ;;  %v1214_v11 = vshll.u32 %v3066_v15, 16  ;;  %v4126_v19 = vld [vmem:[%s3527_s23 + $0x94] sm:$0xf] }
  0xa8   : > { %1415 = vrot.lane.b32.xlu0 %v1377_v31, %s3476_s25  ;;  %3263 = vmatprep.mubr.msk.bf16.mxu0 %vm2234_vm11, %v2176_v53  ;;  %v4055_v29 = vpop.permute.xlu1 %764  ;;  %v2899_v31 = vld [vmem:[%s3527_s23 + $0x84] sm:$0xf]  ;;  %v709_v49 = vsel %vm565_vm1, %v704_v21, %v708_v36  ;;  %v873_v53 = vrot.slane %v4050_v4, 1  ;;  %v1892_v56 = vsel %vm838_vm0, %v1890_v17, %v1891_v47  ;;  %v1207_v14 = vshll.u32 %v3424_v60, 16  ;;  %v267_v17 = vld [vmem:[%s3527_s23 + $0x90] sm:$0xf] }
  0xa9   : > { %v3065_v30 = vcombine.low %v2899_v31, %v4083_v10  ;;  %v869_v58 = vrot.slane %v3049_v52, 1  ;;  %v3098_v16 = vcombine.low %v2938_v48, %v4076_v26  ;;  %v4122_v2 = vcombine.low %v2965_v5, %v4112_v55  ;;  %v4138_v33 = vld [vmem:[%s3527_s23 + $0x94] sm:$0xf]  ;;  %v4143_v52 = vld [vmem:[%s3527_s23 + $0xa4] ss:$0 sps:$4 sm:$0x11]  }
  0xaa   : > { %v1914_v8 = vpop.permute.xlu0 %1913  ;;  %1529 = vrot.lane.b32.xlu1 %v3970_v45, %s3480_s8  ;;  %v1698_v45 = vsel %vm565_vm1, %v1693_v25, %v1697_v3  ;;  %v874_v4 = vsel %vm838_vm0, %v872_v39, %v873_v53  ;;  %v2937_v25 = vld [vmem:[%s3527_s23 + $0x84] sm:$0xe]  ;;  %v1212_v3 = vshrl.u32 %v3066_v15, 16  ;;  %v1209_v26 = vrot.slane %v1207_v14, 1 }
  0xab   : > { %v2178_v9 = vsel %vm2174_vm10, %v2145_v59, %v1914_v8  ;;  %v1202_v23 = vshll.u32 %v3065_v30, 16  ;;  %v1216_v59 = vrot.slane %v1214_v11, 1  ;;  %v1219_v8 = vshll.u32 %v3423_v54, 16  ;;  %v4151_v53 = vld [vmem:[%s3527_s23 + $0x98] ss:$0 sps:$4 sm:$0x11]  }
  0xac   : > { %1527 = vrot.lane.b32.xlu0 %v3976_v57, %s3480_s8  ;;  %3264 = vmatmul.mubr.msk.bf16.vlgmr.msra.gmra.mrb[0].mxu0 %vm2234_vm11, %v2178_v9  ;;  %v4070_v1 = vpop.permute.xlu1 %893  ;;  %v871_v9 = vsel %vm838_vm0, %v869_v58, %v870_v44  ;;  %v1200_v12 = vshrl.u32 %v3065_v30, 16  ;;  %v4134_v31 = vcombine.low %v2963_v43, %v4126_v19  ;;  %v1384_v21 = vrot.slane %v3098_v16, 1  ;;  %v269_v44 = vld [vmem:[%s3527_s23 + $0x9c] sm:$0xf]  ;;  %v3001_v43 = vld [vmem:[%s3527_s23 + $0x90] sm:$0xe] }
  0xad   : > { %v1217_v62 = vor.u32 %v1216_v59, %v1212_v3  ;;  %v1221_v22 = vrot.slane %v1219_v8, 1  ;;  %v1726_v36 = vshll.u32 %v4122_v2, 16  ;;  %v1382_v47 = vrot.slane %v3424_v60, 1  ;;  %v4174_v3 = vld [vmem:[%s3527_s23 + $0x98] ss:$0 sps:$4 sm:$0x11]  }
  0xae   : > { %v4078_v57 = vpop.permute.xlu0 %891  ;;  %1801 = vrot.lane.b32.xlu1 %v1710_v0, %s3481_s9  ;;  %v1204_v0 = vrot.slane %v1202_v23, 1  ;;  %v4154_v11 = vcombine.low %v267_v17, %v4138_v33  ;;  %v1714_v58 = vshll.u32 %v4134_v31, 16  ;;  %v1724_v60 = vshrl.u32 %v4122_v2, 16 }
  0xaf   : > { %v1222_v39 = vsel %vm565_vm1, %v1217_v62, %v1221_v22  ;;  %v1728_v48 = vrot.slane %v1726_v36, 1  ;;  %v1719_v16 = vshll.u32 %v4151_v53, 16  ;;  %v3145_v36 = vcombine.low %v3001_v43, %v4126_v19 }
  0xb0   : > { %1799 = vrot.lane.b32.xlu0 %v1698_v45, %s3481_s9  ;;  %v4090_v41 = vpop.permute.xlu1 %1005  ;;  %v3097_v45 = vcombine.low %v2937_v25, %v4083_v10  ;;  %v1205_v27 = vor.u32 %v1204_v0, %v1200_v12  ;;  %v1385_v10 = vrot.slane %v3423_v54, 1  ;;  %v1712_v25 = vshrl.u32 %v4134_v31, 16 }
  0xb1   : > { %v1716_v14 = vrot.slane %v1714_v58, 1  ;;  %v304_v58 = vld [vmem:[%s3527_s23 + $0x9c] sm:$0xe]  ;;  %v876_v43 = vrot.slane %v4174_v3, 1 }
  0xb2   : > { %v4096_v34 = vpop.permute.xlu0 %1003  ;;  %778 = vrot.lane.b32.xlu1 %v697_v28, %s3478_s29  ;;  %v1386_v23 = vsel %vm838_vm0, %v1384_v21, %v1385_v10 }
  0xb4   : > { %1927 = vrot.lane.b32.xlu0 %v1889_v42, %s3482_s10  ;;  %v4103_v40 = vpop.permute.xlu1 %1277  ;;  %v1381_v42 = vrot.slane %v3097_v45, 1  ;;  %v1729_v45 = vor.u32 %v1728_v48, %v1724_v60  ;;  %v1893_v48 = vrot.slane %v3145_v36, 1 }
  0xb6   : > { %v1276_v63 = vpop.permute.xlu0 %1275  ;;  %780 = vrot.lane.b32.xlu1 %v709_v49, %s3478_s29  ;;  %v1949_v49 = vsel %vm1943_vm3, %v3611_v18, %v4035_v46  ;;  %v4162_v18 = vld [vmem:[%s3527_s23 + $0xa0] sm:$0xf]  ;;  %v1383_v5 = vsel %vm838_vm0, %v1381_v42, %v1382_v47  ;;  %v1721_v42 = vrot.slane %v1719_v16, 1 }
  0xb7   : > { %v4183_v8 = vcombine.low %v269_v44, %v4162_v18 }
  0xb8   : > { %1929 = vrot.lane.b32.xlu0 %v1892_v56, %s3482_s10  ;;  %v4117_v35 = vpop.permute.xlu1 %1405  ;;  %v1210_v56 = vsel %vm565_vm1, %v1205_v27, %v1209_v26  ;;  %v718_v27 = vshll.u32 %v4174_v3, 16 }
  0xba   : > { %v1404_v51 = vpop.permute.xlu0 %1403  ;;  %909 = vrot.lane.b32.xlu1 %v874_v4, %s3477_s26  ;;  %v1731_v4 = vshll.u32 %v4143_v52, 16 }
  0xbc   : > { %907 = vrot.lane.b32.xlu0 %v871_v9, %s3477_s26  ;;  %v4131_v13 = vpop.permute.xlu1 %1517  ;;  %v1733_v22 = vrot.slane %v1731_v4, 1 }
  0xbe   : > { %v1516_v28 = vpop.permute.xlu0 %1515  ;;  %1021 = vrot.lane.b32.xlu1 %v3066_v15, %s3475_s24  ;;  %v1982_v15 = vsel %vm1976_vm4, %v1949_v49, %v4078_v57 }
  0xbf   : > { %v2015_v46 = vsel %vm2009_vm5, %v1982_v15, %v4096_v34  ;;  %v1951_v34 = vsel %vm1943_vm3, %v3624_v32, %v4055_v29 }
  0xc0   : > { %1019 = vrot.lane.b32.xlu0 %v3065_v30, %s3475_s24  ;;  %v1790_v54 = vpop.permute.xlu1 %1789  ;;  %v2048_v57 = vsel %vm2042_vm6, %v2015_v46, %v1276_v63  ;;  %v713_v63 = vshll.u32 %v4154_v11, 16  ;;  %v1984_v9 = vsel %vm1976_vm4, %v1951_v34, %v4070_v1  ;;  %v4238_v34 = vld [vmem:[%s3527_s23 + $0xa0] sm:$0xf] }
  0xc1   : > { %v2081_v59 = vsel %vm2075_vm7, %v2048_v57, %v1404_v51  ;;  %v2017_v32 = vsel %vm2009_vm5, %v1984_v9, %v4090_v41  ;;  %v711_v41 = vshrl.u32 %v4154_v11, 16  ;;  %v1894_v57 = vrot.slane %v4151_v53, 1 }
  0xc2   : > { %v1788_v30 = vpop.permute.xlu0 %1787  ;;  %1293 = vrot.lane.b32.xlu1 %v1222_v39, %s3479_s7  ;;  %v2114_v12 = vsel %vm2108_vm8, %v2081_v59, %v1516_v28  ;;  %v2050_v62 = vsel %vm2042_vm6, %v2017_v32, %v4103_v40  ;;  %v715_v17 = vrot.slane %v713_v63, 1  ;;  %v4206_v40 = vld [vmem:[%s3527_s23 + $0xa4] ss:$0 sps:$4 sm:$0x11]   ;;  %v725_v28 = vshll.u32 %v4183_v8, 16 }
  0xc3   : > { %v2147_v29 = vsel %vm2141_vm9, %v2114_v12, %v1788_v30  ;;  %v2083_v26 = vsel %vm2075_vm7, %v2050_v62, %v4117_v35  ;;  %v1717_v35 = vor.u32 %v1716_v14, %v1712_v25  ;;  %v3002_v39 = vld [vmem:[%s3527_s23 + $0x9c] sm:$0xe]  ;;  %v730_v46 = vshll.u32 %v4206_v40, 16 }
  0xc4   : > { %1291 = vrot.lane.b32.xlu0 %v1210_v56, %s3479_s7  ;;  %v4188_v0 = vpop.permute.xlu1 %766  ;;  %v2116_v21 = vsel %vm2108_vm8, %v2083_v26, %v4131_v13  ;;  %v1734_v56 = vsel %vm565_vm1, %v1729_v45, %v1733_v22  ;;  %v720_v13 = vrot.slane %v718_v27, 1  ;;  %v716_v19 = vor.u32 %v715_v17, %v711_v41  ;;  %v2903_v25 = vld [vmem:[%s3527_s23 + $0x9c] sm:$0xf]  ;;  %v3439_v22 = vld [vmem:[%s3527_s23 + $0xb0] ss:$0 sps:$4 sm:$0x11]  }
  0xc5   : > { %v2149_v47 = vsel %vm2141_vm9, %v2116_v21, %v1790_v54  ;;  %v723_v54 = vshrl.u32 %v4183_v8, 16  ;;  %v727_v44 = vrot.slane %v725_v28, 1  ;;  %v3146_v30 = vcombine.low %v3002_v39, %v4112_v55  ;;  %v3440_v41 = vld [vmem:[%s3527_s23 + $0xa4] ss:$0 sps:$4 sm:$0x11]  }
  0xc6   : > { %v1916_v51 = vpop.permute.xlu0 %1915  ;;  %1421 = vrot.lane.b32.xlu1 %v1386_v23, %s3476_s25  ;;  %v1722_v60 = vsel %vm565_vm1, %v1717_v35, %v1721_v42  ;;  %v3052_v59 = vcombine.low %v304_v58, %v4162_v18  ;;  %v721_v63 = vsel %vm565_vm1, %v716_v19, %v720_v13  ;;  %v732_v53 = vrot.slane %v730_v46, 1  ;;  %v2939_v21 = vld [vmem:[%s3527_s23 + $0x9c] sm:$0xe]  ;;  %v4269_v39 = vld [vmem:[%s3527_s23 + $0xb8] sm:$0xf] }
  0xc7   : > { %v2180_v1 = vsel %vm2174_vm10, %v2147_v29, %v1916_v51  ;;  %v728_v9 = vor.u32 %v727_v44, %v723_v54  ;;  %v1895_v16 = vsel %vm838_vm0, %v1893_v48, %v1894_v57  ;;  %v1896_v32 = vrot.slane %v3146_v30, 1  ;;  %v2967_v46 = vld [vmem:[%s3527_s23 + $0xa8] sm:$0xf] }
  0xc8   : > { %1419 = vrot.lane.b32.xlu0 %v1383_v5, %s3476_s25  ;;  %3267 = vmatprep.mubr.msk.bf16.mxu0 %vm2234_vm11, %v2180_v1  ;;  %v4211_v10 = vpop.permute.xlu1 %768  ;;  %v2906_v5 = vld [vmem:[%s3527_s23 + $0xac] sm:$0xf]  ;;  %v1897_v29 = vrot.slane %v4143_v52, 1  ;;  %v3067_v18 = vcombine.low %v2903_v25, %v4238_v34  ;;  %v879_v51 = vrot.slane %v4206_v40, 1  ;;  %v878_v62 = vrot.slane %v3052_v59, 1 }
  0xc9   : > { %v733_v45 = vsel %vm565_vm1, %v728_v9, %v732_v53  ;;  %v2940_v40 = vld [vmem:[%s3527_s23 + $0xa8] sm:$0xe]  ;;  %v1243_v42 = vshll.u32 %v3439_v22, 16  ;;  %v1231_v19 = vshll.u32 %v3440_v41, 16  ;;  %v3099_v44 = vcombine.low %v2939_v21, %v4238_v34 }
  0xca   : > { %v1918_v49 = vpop.permute.xlu0 %1917  ;;  %1533 = vrot.lane.b32.xlu1 %v4122_v2, %s3480_s8  ;;  %v303_v2 = vld [vmem:[%s3527_s23 + $0x90] sm:$0xe]  ;;  %v1898_v26 = vsel %vm838_vm0, %v1896_v32, %v1897_v29  ;;  %v1226_v17 = vshll.u32 %v3067_v18, 16  ;;  %v880_v36 = vsel %vm838_vm0, %v878_v62, %v879_v51  ;;  %v1224_v13 = vshrl.u32 %v3067_v18, 16  ;;  %v271_v59 = vld [vmem:[%s3527_s23 + $0xa8] sm:$0xf] }
  0xcb   : > { %v2182_v15 = vsel %vm2174_vm10, %v2149_v47, %v1918_v49  ;;  %v3051_v55 = vcombine.low %v303_v2, %v4138_v33  ;;  %v3100_v47 = vcombine.low %v2940_v40, %v2906_v5  ;;  %v2969_v49 = vld [vmem:[%s3527_s23 + $0xb4] sm:$0xf]  ;;  %v4277_v2 = vld [vmem:[%s3527_s23 + $0xac] sm:$0xf]  ;;  %v1245_v48 = vrot.slane %v1243_v42, 1 }
  0xcc   : > { %1531 = vrot.lane.b32.xlu0 %v4134_v31, %s3480_s8  ;;  %3268 = vmatmul.mubr.msk.bf16.gmra.mrb[4].mxu0 %vm2234_vm11, %v2182_v15  ;;  %v4228_v23 = vpop.permute.xlu1 %897  ;;  %v2905_v31 = vld [vmem:[%s3527_s23 + $0xa8] sm:$0xf]  ;;  %v1228_v58 = vrot.slane %v1226_v17, 1  ;;  %v4281_v30 = vcombine.low %v2969_v49, %v4269_v39  ;;  %v4287_v34 = vcombine.low %v2967_v46, %v4277_v2  ;;  %v1391_v9 = vrot.slane %v3439_v22, 1 }
  0xcd   : > { %v3068_v12 = vcombine.low %v2905_v31, %v2906_v5  ;;  %v875_v1 = vrot.slane %v3051_v55, 1  ;;  %v1233_v5 = vrot.slane %v1231_v19, 1  ;;  %v1390_v25 = vrot.slane %v3100_v47, 1  ;;  %v4291_v55 = vld [vmem:[%s3527_s23 + $0xac] sm:$0xf] }
  0xce   : > { %v4234_v4 = vpop.permute.xlu0 %895  ;;  %1805 = vrot.lane.b32.xlu1 %v1734_v56, %s3481_s9  ;;  %v1229_v31 = vor.u32 %v1228_v58, %v1224_v13  ;;  %v1387_v53 = vrot.slane %v3099_v44, 1  ;;  %v4294_v32 = vld [vmem:[%s3527_s23 + $0xbc] ss:$0 sps:$4 sm:$0x11]   ;;  %v1750_v29 = vshll.u32 %v4281_v30, 16  ;;  %v1953_v51 = vsel %vm1943_vm3, %v3688_v50, %v4188_v0 }
  0xcf   : > { %v1238_v52 = vshll.u32 %v3068_v12, 16  ;;  %v1236_v3 = vshrl.u32 %v3068_v12, 16  ;;  %v877_v56 = vsel %vm838_vm0, %v875_v1, %v876_v43  ;;  %v4307_v62 = vcombine.low %v271_v59, %v4291_v55  ;;  %v4315_v50 = vld [vmem:[%s3527_s23 + $0xb8] sm:$0xf]  ;;  %v3003_v46 = vld [vmem:[%s3527_s23 + $0xa8] sm:$0xe] }
  0xd0   : > { %1803 = vrot.lane.b32.xlu0 %v1722_v60, %s3481_s9  ;;  %v4245_v14 = vpop.permute.xlu1 %1009  ;;  %v1986_v1 = vsel %vm1976_vm4, %v1953_v51, %v4234_v4  ;;  %v1234_v22 = vsel %vm565_vm1, %v1229_v31, %v1233_v5  ;;  %v1755_v40 = vshll.u32 %v4294_v32, 16  ;;  %v1752_v21 = vrot.slane %v1750_v29, 1  ;;  %v4359_v59 = vld [vmem:[%s3527_s23 + $0xbc] ss:$0 sps:$4 sm:$0x11]  }
  0xd1   : > { %v1240_v35 = vrot.slane %v1238_v52, 1  ;;  %v1738_v52 = vshll.u32 %v4287_v34, 16 }
  0xd2   : > { %v4250_v33 = vpop.permute.xlu0 %1007  ;;  %782 = vrot.lane.b32.xlu1 %v721_v63, %s3478_s29  ;;  %v1757_v44 = vrot.slane %v1755_v40, 1  ;;  %v2909_v40 = vld [vmem:[%s3527_s23 + $0xc0] sm:$0xf] }
  0xd3   : > { %v1241_v60 = vor.u32 %v1240_v35, %v1236_v3  ;;  %v2019_v0 = vsel %vm2009_vm5, %v1986_v1, %v4250_v33  ;;  %v1748_v3 = vshrl.u32 %v4281_v30, 16  ;;  %v4327_v35 = vld [vmem:[%s3527_s23 + $0xb0] ss:$0 sps:$4 sm:$0x11]   ;;  %v1955_v33 = vsel %vm1943_vm3, %v3702_v61, %v4211_v10 }
  0xd4   : > { %1931 = vrot.lane.b32.xlu0 %v1895_v16, %s3482_s10  ;;  %v4258_v27 = vpop.permute.xlu1 %1281  ;;  %v1388_v16 = vrot.slane %v3440_v41, 1  ;;  %v1392_v41 = vsel %vm838_vm0, %v1390_v25, %v1391_v9  ;;  %v1988_v49 = vsel %vm1976_vm4, %v1955_v33, %v4228_v23  ;;  %v1740_v58 = vrot.slane %v1738_v52, 1  ;;  %v4393_v33 = vld [vmem:[%s3527_s23 + $0xb8] sm:$0xf] }
  0xd5   : > { %v1246_v43 = vsel %vm565_vm1, %v1241_v60, %v1245_v48  ;;  %v2021_v61 = vsel %vm2009_vm5, %v1988_v49, %v4245_v14  ;;  %v1753_v48 = vor.u32 %v1752_v21, %v1748_v3  ;;  %v742_v31 = vshll.u32 %v4327_v35, 16  ;;  %v305_v21 = vld [vmem:[%s3527_s23 + $0xa8] sm:$0xe] }
  0xd6   : > { %v1280_v28 = vpop.permute.xlu0 %1279  ;;  %784 = vrot.lane.b32.xlu1 %v733_v45, %s3478_s29  ;;  %v4304_v45 = vld [vmem:[%s3527_s23 + $0xb0] ss:$0 sps:$4 sm:$0x11]   ;;  %v1389_v17 = vsel %vm838_vm0, %v1387_v53, %v1388_v16  ;;  %v2054_v60 = vsel %vm2042_vm6, %v2021_v61, %v4258_v27  ;;  %v735_v14 = vshrl.u32 %v4307_v62, 16 }
  0xd7   : > { %v2052_v4 = vsel %vm2042_vm6, %v2019_v0, %v1280_v28  ;;  %v737_v28 = vshll.u32 %v4307_v62, 16  ;;  %v1743_v19 = vshll.u32 %v4304_v45, 16  ;;  %v306_v0 = vld [vmem:[%s3527_s23 + $0xb4] sm:$0xe] }
  0xd8   : > { %1933 = vrot.lane.b32.xlu0 %v1898_v26, %s3482_s10  ;;  %v4271_v15 = vpop.permute.xlu1 %1409  ;;  %v273_v26 = vld [vmem:[%s3527_s23 + $0xb4] sm:$0xf] }
  0xd9   : > { %v4336_v47 = vcombine.low %v273_v26, %v4315_v50  ;;  %v2087_v5 = vsel %vm2075_vm7, %v2054_v60, %v4271_v15  ;;  %v739_v25 = vrot.slane %v737_v28, 1  ;;  %v1745_v16 = vrot.slane %v1743_v19, 1  ;;  %v3457_v60 = vld [vmem:[%s3527_s23 + $0xc8] ss:$0 sps:$4 sm:$0x11]  }
  0xda   : > { %v1408_v54 = vpop.permute.xlu0 %1407  ;;  %913 = vrot.lane.b32.xlu1 %v880_v36, %s3477_s26  ;;  %v1736_v36 = vshrl.u32 %v4287_v34, 16  ;;  %v3147_v15 = vcombine.low %v3003_v46, %v4277_v2  ;;  %v754_v26 = vshll.u32 %v4359_v59, 16  ;;  %v3054_v28 = vcombine.low %v306_v0, %v4315_v50 }
  0xdb   : > { %v2085_v42 = vsel %vm2075_vm7, %v2052_v4, %v1408_v54  ;;  %v749_v27 = vshll.u32 %v4336_v47, 16  ;;  %v740_v2 = vor.u32 %v739_v25, %v735_v14  ;;  %v4386_v4 = vld [vmem:[%s3527_s23 + $0xc4] sm:$0xf]  ;;  %v885_v46 = vrot.slane %v4359_v59, 1  ;;  %v2941_v59 = vld [vmem:[%s3527_s23 + $0xb4] sm:$0xe] }
  0xdc   : > { %911 = vrot.lane.b32.xlu0 %v877_v56, %s3477_s26  ;;  %v4284_v57 = vpop.permute.xlu1 %1521  ;;  %v1741_v53 = vor.u32 %v1740_v58, %v1736_v36  ;;  %v2907_v36 = vld [vmem:[%s3527_s23 + $0xb4] sm:$0xf]  ;;  %v756_v49 = vrot.slane %v754_v26, 1  ;;  %v3458_v14 = vld [vmem:[%s3527_s23 + $0xbc] ss:$0 sps:$4 sm:$0x11]  }
  0xdd   : > { %v751_v52 = vrot.slane %v749_v27, 1  ;;  %v4430_v26 = vld [vmem:[%s3527_s23 + $0xc4] sm:$0xf] }
  0xde   : > { %v1520_v63 = vpop.permute.xlu0 %1519  ;;  %1025 = vrot.lane.b32.xlu1 %v3068_v12, %s3475_s24 }
  0xdf   : > { %v2118_v56 = vsel %vm2108_vm8, %v2085_v42, %v1520_v63  ;;  %v2120_v63 = vsel %vm2108_vm8, %v2087_v5, %v4284_v57  ;;  %v1758_v57 = vsel %vm565_vm1, %v1753_v48, %v1757_v44  ;;  %v1903_v42 = vrot.slane %v4294_v32, 1 }
  0xe0   : > { %1023 = vrot.lane.b32.xlu0 %v3067_v18, %s3475_s24  ;;  %v1794_v12 = vpop.permute.xlu1 %1793  ;;  %v3069_v32 = vcombine.low %v2907_v36, %v4393_v33  ;;  %v884_v44 = vrot.slane %v3054_v28, 1  ;;  %v882_v5 = vrot.slane %v4327_v35, 1 }
  0xe1   : > { %v2153_v29 = vsel %vm2141_vm9, %v2120_v63, %v1794_v12  ;;  %v747_v12 = vshrl.u32 %v4336_v47, 16  ;;  %v2942_v63 = vld [vmem:[%s3527_s23 + $0xc0] sm:$0xe] }
  0xe2   : > { %v1792_v18 = vpop.permute.xlu0 %1791  ;;  %1297 = vrot.lane.b32.xlu1 %v1246_v43, %s3479_s7  ;;  %v3004_v43 = vld [vmem:[%s3527_s23 + $0xb4] sm:$0xe]  ;;  %v1250_v25 = vshll.u32 %v3069_v32, 16  ;;  %v3102_v0 = vcombine.low %v2942_v63, %v4386_v4 }
  0xe3   : > { %v2151_v10 = vsel %vm2141_vm9, %v2118_v56, %v1792_v18  ;;  %v1746_v18 = vsel %vm565_vm1, %v1741_v53, %v1745_v16  ;;  %v3070_v56 = vcombine.low %v2909_v40, %v4386_v4  ;;  %v886_v53 = vsel %vm838_vm0, %v884_v44, %v885_v46 }
  0xe4   : > { %1295 = vrot.lane.b32.xlu0 %v1234_v22, %s3479_s7  ;;  %v4341_v13 = vpop.permute.xlu1 %770  ;;  %v744_v22 = vrot.slane %v742_v31, 1  ;;  %v1396_v4 = vrot.slane %v3102_v0, 1 }
  0xe5   : > { %v1260_v16 = vshrl.u32 %v3070_v56, 16 }
  0xe6   : > { %v1920_v54 = vpop.permute.xlu0 %1919  ;;  %1425 = vrot.lane.b32.xlu1 %v1392_v41, %s3476_s25  ;;  %v1899_v41 = vrot.slane %v3147_v15, 1 }
  0xe7   : > { %v2184_v23 = vsel %vm2174_vm10, %v2151_v10, %v1920_v54  ;;  %v3053_v10 = vcombine.low %v305_v21, %v4291_v55 }
  0xe8   : > { %1423 = vrot.lane.b32.xlu0 %v1389_v17, %s3476_s25  ;;  %3271 = vmatprep.mubr.msk.bf16.mxu0 %vm2234_vm11, %v2184_v23  ;;  %v4364_v9 = vpop.permute.xlu1 %772  ;;  %v1900_v17 = vrot.slane %v4304_v45, 1  ;;  %v752_v45 = vor.u32 %v751_v52, %v747_v12  ;;  %v1262_v23 = vshll.u32 %v3070_v56, 16  ;;  %v2971_v52 = vld [vmem:[%s3527_s23 + $0xc0] sm:$0xf] }
  0xe9   : > { %v881_v31 = vrot.slane %v3053_v10, 1 }
  0xea   : > { %v1922_v51 = vpop.permute.xlu0 %1921  ;;  %1537 = vrot.lane.b32.xlu1 %v4281_v30, %s3480_s8  ;;  %v1901_v19 = vsel %vm838_vm0, %v1899_v41, %v1900_v17  ;;  %v757_v54 = vsel %vm565_vm1, %v752_v45, %v756_v49  ;;  %v1264_v15 = vrot.slane %v1262_v23, 1  ;;  %v1397_v45 = vrot.slane %v3457_v60, 1 }
  0xeb   : > { %v2186_v1 = vsel %vm2174_vm10, %v2153_v29, %v1922_v51  ;;  %v1267_v29 = vshll.u32 %v3457_v60, 16  ;;  %v2973_v51 = vld [vmem:[%s3527_s23 + $0xcc] sm:$0xf]  ;;  %v883_v35 = vsel %vm838_vm0, %v881_v31, %v882_v5  ;;  %v1394_v49 = vrot.slane %v3458_v14, 1 }
  0xec   : > { %1535 = vrot.lane.b32.xlu0 %v4287_v34, %s3480_s8  ;;  %3272 = vmatmul.mubr.msk.bf16.gmra.mrb[8].mxu0 %vm2234_vm11, %v2186_v1  ;;  %v4379_v30 = vpop.permute.xlu1 %901  ;;  %v3148_v34 = vcombine.low %v3004_v43, %v4269_v39  ;;  %v745_v39 = vsel %vm565_vm1, %v740_v2, %v744_v22  ;;  %v1248_v1 = vshrl.u32 %v3069_v32, 16  ;;  %v1255_v22 = vshll.u32 %v3458_v14, 16  ;;  %v4426_v2 = vld [vmem:[%s3527_s23 + $0xd0] sm:$0xf] }
  0xed   : > { %v1265_v41 = vor.u32 %v1264_v15, %v1260_v16  ;;  %v1269_v17 = vrot.slane %v1267_v29, 1  ;;  %v1959_v5 = vsel %vm1943_vm3, %v3785_v37, %v4364_v9  ;;  %v3006_v15 = vld [vmem:[%s3527_s23 + $0xcc] sm:$0xe] }
  0xee   : > { %v4388_v3 = vpop.permute.xlu0 %899  ;;  %1809 = vrot.lane.b32.xlu1 %v1758_v57, %s3481_s9  ;;  %v1902_v61 = vrot.slane %v3148_v34, 1  ;;  %v1252_v57 = vrot.slane %v1250_v25, 1  ;;  %v3118_v34 = vcombine.low %v2973_v51, %v4426_v2  ;;  %v1257_v36 = vrot.slane %v1255_v22, 1  ;;  %v3005_v51 = vld [vmem:[%s3527_s23 + $0xc0] sm:$0xe] }
  0xef   : > { %v3150_v22 = vcombine.low %v3006_v15, %v4426_v2 }
  0xf0   : > { %1807 = vrot.lane.b32.xlu0 %v1746_v18, %s3481_s9  ;;  %v4401_v58 = vpop.permute.xlu1 %1013  ;;  %v1904_v55 = vsel %vm838_vm0, %v1902_v61, %v1903_v42  ;;  %v3101_v18 = vcombine.low %v2941_v59, %v4393_v33  ;;  %v1253_v21 = vor.u32 %v1252_v57, %v1248_v1  ;;  %v3117_v42 = vcombine.low %v2971_v52, %v4430_v26 }
  0xf1   : > { %v1270_v61 = vsel %vm565_vm1, %v1265_v41, %v1269_v17  ;;  %v1774_v10 = vshll.u32 %v3118_v34, 16  ;;  %v1772_v31 = vshrl.u32 %v3118_v34, 16 }
  0xf2   : > { %v1012_v50 = vpop.permute.xlu0 %1011  ;;  %786 = vrot.lane.b32.xlu1 %v745_v39, %s3478_s29  ;;  %v4439_v39 = vld [vmem:[%s3527_s23 + $0xd4] ss:$0 sps:$4 sm:$0x11]   ;;  %v1393_v33 = vrot.slane %v3101_v18, 1  ;;  %v1258_v46 = vsel %vm565_vm1, %v1253_v21, %v1257_v36  ;;  %v1762_v23 = vshll.u32 %v3117_v42, 16  ;;  %v1760_v25 = vshrl.u32 %v3117_v42, 16 }
  0xf3   : > { %v1776_v14 = vrot.slane %v1774_v10, 1  ;;  %v3149_v18 = vcombine.low %v3005_v51, %v4430_v26  ;;  %v1908_v21 = vrot.slane %v3150_v22, 1 }
  0xf4   : > { %1935 = vrot.lane.b32.xlu0 %v1901_v19, %s3482_s10  ;;  %v4411_v48 = vpop.permute.xlu1 %1285  ;;  %v1957_v19 = vsel %vm1943_vm3, %v3764_v20, %v4341_v13  ;;  %v1398_v13 = vsel %vm838_vm0, %v1396_v4, %v1397_v45 }
  0xf5   : > { %v1777_v57 = vor.u32 %v1776_v14, %v1772_v31  ;;  %v1905_v26 = vrot.slane %v3149_v18, 1 }
  0xf6   : > { %v1284_v27 = vpop.permute.xlu0 %1283  ;;  %788 = vrot.lane.b32.xlu1 %v757_v54, %s3478_s29  ;;  %v1990_v54 = vsel %vm1976_vm4, %v1957_v19, %v4388_v3  ;;  %v1779_v3 = vshll.u32 %v4439_v39, 16 }
  0xf7   : > { %v2023_v60 = vsel %vm2009_vm5, %v1990_v54, %v1012_v50 }
  0xf8   : > { %1937 = vrot.lane.b32.xlu0 %v1904_v55, %s3482_s10  ;;  %v4422_v43 = vpop.permute.xlu1 %1413  ;;  %v2056_v20 = vsel %vm2042_vm6, %v2023_v60, %v1284_v27  ;;  %v1992_v27 = vsel %vm1976_vm4, %v1959_v5, %v4379_v30 }
  0xf9   : > { %v2025_v29 = vsel %vm2009_vm5, %v1992_v27, %v4401_v58  ;;  %v1781_v58 = vrot.slane %v1779_v3, 1 }
  0xfa   : > { %v1412_v12 = vpop.permute.xlu0 %1411  ;;  %917 = vrot.lane.b32.xlu1 %v886_v53, %s3477_s26  ;;  %v1764_v53 = vrot.slane %v1762_v23, 1 }
  0xfb   : > { %v2089_v50 = vsel %vm2075_vm7, %v2056_v20, %v1412_v12  ;;  %v1782_v2 = vsel %vm565_vm1, %v1777_v57, %v1781_v58 }
  0xfc   : > { %915 = vrot.lane.b32.xlu0 %v883_v35, %s3477_s26  ;;  %v1526_v40 = vpop.permute.xlu1 %1525  ;;  %v2058_v35 = vsel %vm2042_vm6, %v2025_v29, %v4411_v48  ;;  %v1765_v0 = vor.u32 %v1764_v53, %v1760_v25  ;;  %s241_s26 = scalar_lea.vmem %s4762_s5, %s4764_s19 }
  0xfd   : > { %v2091_v30 = vsel %vm2075_vm7, %v2058_v35, %v4422_v43 }
  0xfe   : > { %v1524_v28 = vpop.permute.xlu0 %1523  ;;  %1029 = vrot.lane.b32.xlu1 %v3070_v56, %s3475_s24  ;;  %v3464_v56 = vld [vmem:[%s3527_s23 + $0xc8] ss:$0 sps:$4 sm:$0x11]   ;;  %v2124_v12 = vsel %vm2108_vm8, %v2091_v30, %v1526_v40  ;;  %v1909_v40 = vrot.slane %v4439_v39, 1  ;;  %s238_s23 = scalar_lea.vmem %s4761_s4, %s4764_s19 }
  0xff   : > { %v2122_v63 = vsel %vm2108_vm8, %v2089_v50, %v1524_v28  ;;  %v1767_v16 = vshll.u32 %v3464_v56, 16  ;;  %v1906_v4 = vrot.slane %v3464_v56, 1 }
 0x100   : > { %1027 = vrot.lane.b32.xlu0 %v3069_v32, %s3475_s24  ;;  %v1798_v44 = vpop.permute.xlu1 %1797  ;;  %v1395_v32 = vsel %vm838_vm0, %v1393_v33, %v1394_v49 }
 0x101   : > { %v1769_v48 = vrot.slane %v1767_v16, 1  ;;  %v2157_v41 = vsel %vm2141_vm9, %v2124_v12, %v1798_v44  ;;  %v1907_v33 = vsel %vm838_vm0, %v1905_v26, %v1906_v4 }
 0x102   : > { %v1796_v55 = vpop.permute.xlu0 %1795  ;;  %1301 = vrot.lane.b32.xlu1 %v1270_v61, %s3479_s7 }
 0x103   : > { %v2155_v37 = vsel %vm2141_vm9, %v2122_v63, %v1796_v55  ;;  %v1770_v28 = vsel %vm565_vm1, %v1765_v0, %v1769_v48 }
 0x104   : > { %1299 = vrot.lane.b32.xlu0 %v1258_v46, %s3479_s7  ;;  %v775_v59 = vpop.permute.xlu1 %774 }
 0x105   : > { %v1961_v46 = vsel %vm1943_vm3, %v3863_v6, %v775_v59 }
 0x106   : > { %v1924_v9 = vpop.permute.xlu0 %1923  ;;  %1429 = vrot.lane.b32.xlu1 %v1398_v13, %s3476_s25 }
 0x107   : > { %v2188_v1 = vsel %vm2174_vm10, %v2155_v37, %v1924_v9 }
 0x108   : > { %1427 = vrot.lane.b32.xlu0 %v1395_v32, %s3476_s25  ;;  %3275 = vmatprep.mubr.msk.bf16.mxu0 %vm2234_vm11, %v2188_v1  ;;  %v777_v52 = vpop.permute.xlu1 %776 }
 0x109   : > { %v1963_v20 = vsel %vm1943_vm3, %v3880_v24, %v777_v52 }
 0x10a   : > { %v1926_v17 = vpop.permute.xlu0 %1925  ;;  %1541 = vrot.lane.b32.xlu1 %v3118_v34, %s3480_s8  ;;  %v1910_v34 = vsel %vm838_vm0, %v1908_v21, %v1909_v40 }
 0x10b   : > { %v2190_v43 = vsel %vm2174_vm10, %v2157_v41, %v1926_v17 }
 0x10c   : > { %1539 = vrot.lane.b32.xlu0 %v3117_v42, %s3480_s8  ;;  %3276 = vmatmul.mubr.msk.bf16.gmra.mrb[12].mxu0 %vm2234_vm11, %v2190_v43  ;;  %v906_v36 = vpop.permute.xlu1 %905 }
 0x10d   : > { %v1996_v32 = vsel %vm1976_vm4, %v1963_v20, %v906_v36 }
 0x10e   : > { %v904_v45 = vpop.permute.xlu0 %903  ;;  %1813 = vrot.lane.b32.xlu1 %v1782_v2, %s3481_s9 }
 0x10f   : > { %v1994_v56 = vsel %vm1976_vm4, %v1961_v46, %v904_v45 }
 0x110   : > { %1811 = vrot.lane.b32.xlu0 %v1770_v28, %s3481_s9  ;;  %v1018_v42 = vpop.permute.xlu1 %1017 }
 0x111   : > { %v2029_v6 = vsel %vm2009_vm5, %v1996_v32, %v1018_v42 }
 0x112   : > { %v1016_v49 = vpop.permute.xlu0 %1015  ;;  %1941 = vrot.lane.b32.xlu1 %v1910_v34, %s3482_s10 }
 0x113   : > { %v2027_v60 = vsel %vm2009_vm5, %v1994_v56, %v1016_v49 }
 0x114   : > { %1939 = vrot.lane.b32.xlu0 %v1907_v33, %s3482_s10  ;;  %v1290_v39 = vpop.permute.xlu1 %1289 }
 0x115   : > { %v2062_v25 = vsel %vm2042_vm6, %v2029_v6, %v1290_v39 }
 0x116   : > { %v1288_v19 = vpop.permute.xlu0 %1287 }
 0x117   : > { %v2060_v31 = vsel %vm2042_vm6, %v2027_v60, %v1288_v19 }
 0x118   : > { %v1418_v61 = vpop.permute.xlu1 %1417 }
 0x119   : > { %v2095_v63 = vsel %vm2075_vm7, %v2062_v25, %v1418_v61 }
 0x11a   : > { %v1416_v10 = vpop.permute.xlu0 %1415 }
 0x11b   : > { %v2093_v13 = vsel %vm2075_vm7, %v2060_v31, %v1416_v10 }
 0x11c   : > { %v1530_v54 = vpop.permute.xlu1 %1529 }
 0x11d   : > { %v2128_v24 = vsel %vm2108_vm8, %v2095_v63, %v1530_v54 }
 0x11e   : > { %v1528_v44 = vpop.permute.xlu0 %1527 }
 0x11f   : > { %v2126_v3 = vsel %vm2108_vm8, %v2093_v13, %v1528_v44 }
 0x120   : > { %v1802_v23 = vpop.permute.xlu1 %1801 }
 0x121   : > { %v2161_v53 = vsel %vm2141_vm9, %v2128_v24, %v1802_v23 }
 0x122   : > { %v1800_v55 = vpop.permute.xlu0 %1799 }
 0x123   : > { %v2159_v50 = vsel %vm2141_vm9, %v2126_v3, %v1800_v55 }
 0x124   : > { %v779_v5 = vpop.permute.xlu1 %778 }
 0x125   : > { %v1965_v12 = vsel %vm1943_vm3, %v4006_v7, %v779_v5 }
 0x126   : > { %v1928_v14 = vpop.permute.xlu0 %1927 }
 0x127   : > { %v2192_v27 = vsel %vm2174_vm10, %v2159_v50, %v1928_v14 }
 0x128   : > { %3279 = vmatprep.mubr.msk.bf16.mxu1 %vm2234_vm11, %v2192_v27  ;;  %v781_v59 = vpop.permute.xlu1 %780 }
 0x129   : > { %v1967_v17 = vsel %vm1943_vm3, %v4030_v38, %v781_v59 }
 0x12a   : > { %v1930_v16 = vpop.permute.xlu0 %1929 }
 0x12b   : > { %v2194_v15 = vsel %vm2174_vm10, %v2161_v53, %v1930_v16 }
 0x12c   : > { %3280 = vmatmul.mubr.msk.bf16.vlgmr.msra.gmra.mrb[0].mxu1 %vm2234_vm11, %v2194_v15  ;;  %v910_v29 = vpop.permute.xlu1 %909 }
 0x12d   : > { %v2000_v2 = vsel %vm1976_vm4, %v1967_v17, %v910_v29 }
 0x12e   : > { %v908_v37 = vpop.permute.xlu0 %907 }
 0x12f   : > { %v1998_v52 = vsel %vm1976_vm4, %v1965_v12, %v908_v37 }
 0x130   : > { %v1022_v9 = vpop.permute.xlu1 %1021 }
 0x131   : > { %v2033_v7 = vsel %vm2009_vm5, %v2000_v2, %v1022_v9 }
 0x132   : > { %v1020_v51 = vpop.permute.xlu0 %1019 }
 0x133   : > { %v2031_v48 = vsel %vm2009_vm5, %v1998_v52, %v1020_v51  ;;  %v4558_v52 = vld [vmem:[%s4759_s2] ss:$0 sm:$0xff] }
 0x134   : > { %v1294_v35 = vpop.permute.xlu1 %1293 }
 0x135   : > { %v2066_v26 = vsel %vm2042_vm6, %v2033_v7, %v1294_v35 }
 0x136   : > { %v1292_v1 = vpop.permute.xlu0 %1291 }
 0x137   : > { %v2064_v41 = vsel %vm2042_vm6, %v2031_v48, %v1292_v1 }
 0x138   : > { %v1422_v30 = vpop.permute.xlu1 %1421 }
 0x139   : > { %v2099_v45 = vsel %vm2075_vm7, %v2066_v26, %v1422_v30 }
 0x13a   : > { %v1420_v57 = vpop.permute.xlu0 %1419 }
 0x13b   : > { %v2097_v43 = vsel %vm2075_vm7, %v2064_v41, %v1420_v57 }
 0x13c   : > { %v1534_v58 = vpop.permute.xlu1 %1533 }
 0x13d   : > { %v2132_v38 = vsel %vm2108_vm8, %v2099_v45, %v1534_v58 }
 0x13e   : > { %v1532_v22 = vpop.permute.xlu0 %1531 }
 0x13f   : > { %v2130_v21 = vsel %vm2108_vm8, %v2097_v43, %v1532_v22 }
 0x140   : > { %v1806_v0 = vpop.permute.xlu1 %1805 }
 0x141   : > { %v2165_v42 = vsel %vm2141_vm9, %v2132_v38, %v1806_v0 }
 0x142   : > { %v1804_v18 = vpop.permute.xlu0 %1803 }
 0x143   : > { %v2163_v36 = vsel %vm2141_vm9, %v2130_v21, %v1804_v18 }
 0x144   : > { %v783_v40 = vpop.permute.xlu1 %782 }
 0x145   : > { %v1969_v55 = vsel %vm1943_vm3, %v4154_v11, %v783_v40 }
 0x146   : > { %v1932_v28 = vpop.permute.xlu0 %1931 }
 0x147   : > { %v2196_v4 = vsel %vm2174_vm10, %v2163_v36, %v1932_v28 }
 0x148   : > { %3283 = vmatprep.mubr.msk.bf16.mxu1 %vm2234_vm11, %v2196_v4  ;;  %v785_v34 = vpop.permute.xlu1 %784 }
 0x149   : > { %v1971_v5 = vsel %vm1943_vm3, %v4183_v8, %v785_v34 }
 0x14a   : > { %v1934_v33 = vpop.permute.xlu0 %1933 }
 0x14b   : > { %v2198_v49 = vsel %vm2174_vm10, %v2165_v42, %v1934_v33 }
 0x14c   : > { %3284 = vmatmul.mubr.msk.bf16.gmra.mrb[4].mxu1 %vm2234_vm11, %v2198_v49  ;;  %v914_v39 = vpop.permute.xlu1 %913 }
 0x14d   : > { %v2004_v50 = vsel %vm1976_vm4, %v1971_v5, %v914_v39 }
 0x14e   : > { %v912_v19 = vpop.permute.xlu0 %911 }
 0x14f   : > { %v2002_v31 = vsel %vm1976_vm4, %v1969_v55, %v912_v19 }
 0x150   : > { %v1026_v61 = vpop.permute.xlu1 %1025 }
 0x151   : > { %v2037_v11 = vsel %vm2009_vm5, %v2004_v50, %v1026_v61 }
 0x152   : > { %v1024_v10 = vpop.permute.xlu0 %1023 }
 0x153   : > { %v2035_v13 = vsel %vm2009_vm5, %v2002_v31, %v1024_v10 }
 0x154   : > { %v1298_v54 = vpop.permute.xlu1 %1297 }
 0x155   : > { %v2070_v24 = vsel %vm2042_vm6, %v2037_v11, %v1298_v54 }
 0x156   : > { %v1296_v44 = vpop.permute.xlu0 %1295 }
 0x157   : > { %v2068_v3 = vsel %vm2042_vm6, %v2035_v13, %v1296_v44 }
 0x158   : > { %v1426_v46 = vpop.permute.xlu1 %1425 }
 0x159   : > { %v2103_v53 = vsel %vm2075_vm7, %v2070_v24, %v1426_v46 }
 0x15a   : > { %v1424_v56 = vpop.permute.xlu0 %1423 }
 0x15b   : > { %v2101_v6 = vsel %vm2075_vm7, %v2068_v3, %v1424_v56 }
 0x15c   : > { %v1538_v23 = vpop.permute.xlu1 %1537 }
 0x15d   : > { %v2136_v8 = vsel %vm2108_vm8, %v2103_v53, %v1538_v23 }
 0x15e   : > { %v1536_v60 = vpop.permute.xlu0 %1535 }
 0x15f   : > { %v2134_v14 = vsel %vm2108_vm8, %v2101_v6, %v1536_v60 }
 0x160   : > { %v1810_v20 = vpop.permute.xlu1 %1809 }
 0x161   : > { %v2169_v15 = vsel %vm2141_vm9, %v2136_v8, %v1810_v20 }
 0x162   : > { %v1808_v32 = vpop.permute.xlu0 %1807 }
 0x163   : > { %v2167_v27 = vsel %vm2141_vm9, %v2134_v14, %v1808_v32 }
 0x164   : > { %v787_v25 = vpop.permute.xlu1 %786 }
 0x165   : > { %v1973_v41 = vsel %vm1943_vm3, %v4307_v62, %v787_v25 }
 0x166   : > { %v1936_v63 = vpop.permute.xlu0 %1935 }
 0x167   : > { %v2200_v59 = vsel %vm2174_vm10, %v2167_v27, %v1936_v63 }
 0x168   : > { %3287 = vmatprep.mubr.msk.bf16.mxu1 %vm2234_vm11, %v2200_v59  ;;  %v789_v16 = vpop.permute.xlu1 %788 }
 0x169   : > { %v1975_v48 = vsel %vm1943_vm3, %v4336_v47, %v789_v16 }
 0x16a   : > { %v1938_v29 = vpop.permute.xlu0 %1937 }
 0x16b   : > { %v2202_v37 = vsel %vm2174_vm10, %v2169_v15, %v1938_v29 }
 0x16c   : > { %3288 = vmatmul.mubr.msk.bf16.gmra.mrb[8].mxu1 %vm2234_vm11, %v2202_v37  ;;  %v918_v9 = vpop.permute.xlu1 %917 }
 0x16d   : > { %v2008_v17 = vsel %vm1976_vm4, %v1975_v48, %v918_v9 }
 0x16e   : > { %v916_v51 = vpop.permute.xlu0 %915 }
 0x16f   : > { %v2006_v21 = vsel %vm1976_vm4, %v1973_v41, %v916_v51 }
 0x170   : > { %v1030_v35 = vpop.permute.xlu1 %1029 }
 0x171   : > { %v2041_v40 = vsel %vm2009_vm5, %v2008_v17, %v1030_v35 }
 0x172   : > { %v1028_v1 = vpop.permute.xlu0 %1027 }
 0x173   : > { %v2039_v36 = vsel %vm2009_vm5, %v2006_v21, %v1028_v1 }
 0x174   : > { %v1302_v30 = vpop.permute.xlu1 %1301 }
 0x175   : > { %v2074_v28 = vsel %vm2042_vm6, %v2041_v40, %v1302_v30 }
 0x176   : > { %v1300_v57 = vpop.permute.xlu0 %1299 }
 0x177   : > { %v2072_v34 = vsel %vm2042_vm6, %v2039_v36, %v1300_v57 }
 0x178   : > { %v1430_v58 = vpop.permute.xlu1 %1429 }
 0x179   : > { %v2107_v42 = vsel %vm2075_vm7, %v2074_v28, %v1430_v58 }
 0x17a   : > { %v1428_v22 = vpop.permute.xlu0 %1427 }
 0x17b   : > { %v2105_v49 = vsel %vm2075_vm7, %v2072_v34, %v1428_v22 }
 0x17c   : > { %v1542_v12 = vpop.permute.xlu1 %1541 }
 0x17d   : > { %v2140_v39 = vsel %vm2108_vm8, %v2107_v42, %v1542_v12 }
 0x17e   : > { %v1540_v0 = vpop.permute.xlu0 %1539 }
 0x17f   : > { %v3265_v18 = vpop.f32.mrb[0].mxu0  ;;  %v2138_v61 = vsel %vm2108_vm8, %v2105_v49, %v1540_v0 }
 0x180   : > { %v2314_v43 = vadd.f32 %v3265_v18, %v4558_v52  ;;  %v2305_v2 = vpop.f32.mrb[1].mxu0  ;;  %v1814_v62 = vpop.permute.xlu1 %1813 }
 0x181   : > { %v2306_v47 = vadd.f32 %v4558_v52, %v2305_v2  ;;  %v3266_v7 = vpop.f32.mrb[2].mxu0  ;;  %v2173_v54 = vsel %vm2141_vm9, %v2140_v39, %v1814_v62 }
 0x182   : > { %v3208_v26 = vpack.c.bf16 %v2314_v43, %v2314_v43  ;;  %v2317_v4 = vadd.f32 %v3266_v7, %v4558_v52  ;;  %v2308_v45 = vpop.f32.mrb[3].mxu0  ;;  %v1812_v38 = vpop.permute.xlu0 %1811  ;;  %v2664_v56 = vmul.f32 %v2314_v43, %v2314_v43  ;;  %v2596_v6 = vsel %vm2174_vm10, %v2314_v43, 0.0 }
 0x183   : > { %v3206_v33 = vpack.c.bf16 %v2306_v47, %v2306_v47  ;;  %v2662_v10 = vmul.f32 %v2306_v47, %v2306_v47  ;;  %v2309_v44 = vadd.f32 %v4558_v52, %v2308_v45  ;;  %v2593_v23 = vsel %vm2174_vm10, %v2306_v47, 0.0 }
 0x184   : > { %2563 = vst.msk [vmem:[%s4572_s20 + $0x8] sm:$0xf] %vm2560_vm12, %v3208_v26  ;;  %v3209_v19 = vpack.c.bf16 %v2317_v4, %v2317_v4  ;;  %v1942_v46 = vpop.permute.xlu1 %1941  ;;  %v2171_v60 = vsel %vm2141_vm9, %v2138_v61, %v1812_v38  ;;  %v2665_v14 = vmul.f32 %v2317_v4, %v2317_v4  ;;  %v2697_v63 = vsel %vm2174_vm10, %v2664_v56, 0.0 }
 0x185   : > { %2561 = vst.msk [vmem:[%s4572_s20] sm:$0xf] %vm2560_vm12, %v3206_v33  ;;  %v2206_v55 = vsel %vm2174_vm10, %v2173_v54, %v1942_v46  ;;  %v3207_v20 = vpack.c.bf16 %v2309_v44, %v2309_v44  ;;  %v2594_v13 = vsel %vm2174_vm10, %v2309_v44, 0.0  ;;  %v2663_v32 = vmul.f32 %v2309_v44, %v2309_v44 }
 0x186   : > { %2564 = vst.msk [vmem:[%s4572_s20 + $0xc] sm:$0xf] %vm2560_vm12, %v3209_v19  ;;  %v1940_v31 = vpop.permute.xlu0 %1939  ;;  %v2595_v5 = vadd.f32 %v2594_v13, %v2593_v23  ;;  %v2694_v50 = vsel %vm2174_vm10, %v2662_v10, 0.0  ;;  %v2598_v24 = vsel %vm2174_vm10, %v2317_v4, 0.0  ;;  %v2699_v8 = vsel %vm2174_vm10, %v2665_v14, 0.0 }
 0x187   : > { %v2204_v3 = vsel %vm2174_vm10, %v2171_v60, %v1940_v31  ;;  %2562 = vst.msk [vmem:[%s4572_s20 + $0x4] sm:$0xf] %vm2560_vm12, %v3207_v20  ;;  %v2695_v25 = vsel %vm2174_vm10, %v2663_v32, 0.0 }
 0x188   : > { %3291 = vmatprep.mubr.msk.bf16.mxu1 %vm2234_vm11, %v2204_v3  ;;  %v2597_v11 = vadd.f32 %v2596_v6, %v2595_v5  ;;  %v2696_v27 = vadd.f32 %v2695_v25, %v2694_v50 }
 0x189   : > { %3292 = vmatmul.mubr.msk.bf16.gmra.mrb[12].mxu1 %vm2234_vm11, %v2206_v55 }
 0x18a   : > { %v2698_v59 = vadd.f32 %v2697_v63, %v2696_v27  ;;  %v2599_v53 = vadd.f32 %v2598_v24, %v2597_v11 }
 0x18c   : > { %v2700_v16 = vadd.f32 %v2699_v8, %v2698_v59 }
 0x19f   : > { %v3269_v15 = vpop.f32.mrb[4].mxu0 }
 0x1a0   : > { %v2330_v29 = vadd.f32 %v3269_v15, %v4558_v52  ;;  %v2321_v37 = vpop.f32.mrb[5].mxu0 }
 0x1a1   : > { %v2322_v9 = vadd.f32 %v4558_v52, %v2321_v37  ;;  %v3270_v51 = vpop.f32.mrb[6].mxu0 }
 0x1a2   : > { %v3212_v35 = vpack.c.bf16 %v2330_v29, %v2330_v29  ;;  %v2333_v1 = vadd.f32 %v3270_v51, %v4558_v52  ;;  %v2324_v30 = vpop.f32.mrb[7].mxu0  ;;  %v2668_v43 = vmul.f32 %v2330_v29, %v2330_v29  ;;  %v2604_v47 = vsel %vm2174_vm10, %v2330_v29, 0.0 }
 0x1a3   : > { %v3210_v57 = vpack.c.bf16 %v2322_v9, %v2322_v9  ;;  %v2600_v58 = vsel %vm2174_vm10, %v2322_v9, 0.0  ;;  %v2666_v22 = vmul.f32 %v2322_v9, %v2322_v9  ;;  %v2325_v12 = vadd.f32 %v4558_v52, %v2324_v30 }
 0x1a4   : > { %2567 = vst.msk [vmem:[%s4572_s20 + $0x18] sm:$0xf] %vm2560_vm12, %v3212_v35  ;;  %v2601_v0 = vadd.f32 %v2600_v58, %v2599_v53  ;;  %v3213_v48 = vpack.c.bf16 %v2333_v1, %v2333_v1  ;;  %v2669_v7 = vmul.f32 %v2333_v1, %v2333_v1  ;;  %v2606_v28 = vsel %vm2174_vm10, %v2333_v1, 0.0 }
 0x1a5   : > { %2565 = vst.msk [vmem:[%s4572_s20 + $0x10] sm:$0xf] %vm2560_vm12, %v3210_v57  ;;  %v2701_v18 = vsel %vm2174_vm10, %v2666_v22, 0.0  ;;  %v3211_v41 = vpack.c.bf16 %v2325_v12, %v2325_v12  ;;  %v2602_v17 = vsel %vm2174_vm10, %v2325_v12, 0.0  ;;  %v2667_v40 = vmul.f32 %v2325_v12, %v2325_v12 }
 0x1a6   : > { %v2702_v2 = vadd.f32 %v2701_v18, %v2700_v16  ;;  %2568 = vst.msk [vmem:[%s4572_s20 + $0x1c] sm:$0xf] %vm2560_vm12, %v3213_v48  ;;  %v2603_v21 = vadd.f32 %v2602_v17, %v2601_v0  ;;  %v2705_v4 = vsel %vm2174_vm10, %v2668_v43, 0.0  ;;  %v2707_v34 = vsel %vm2174_vm10, %v2669_v7, 0.0 }
 0x1a7   : > { %2566 = vst.msk [vmem:[%s4572_s20 + $0x14] sm:$0xf] %vm2560_vm12, %v3211_v41  ;;  %v2703_v36 = vsel %vm2174_vm10, %v2667_v40, 0.0 }
 0x1a8   : > { %v2605_v62 = vadd.f32 %v2604_v47, %v2603_v21  ;;  %v2704_v26 = vadd.f32 %v2703_v36, %v2702_v2 }
 0x1aa   : > { %v2607_v45 = vadd.f32 %v2606_v28, %v2605_v62  ;;  %v2706_v38 = vadd.f32 %v2705_v4, %v2704_v26 }
 0x1ac   : > { %v2708_v42 = vadd.f32 %v2707_v34, %v2706_v38 }
 0x1bf   : > { %v3273_v33 = vpop.f32.mrb[8].mxu0 }
 0x1c0   : > { %v2346_v49 = vadd.f32 %v3273_v33, %v4558_v52  ;;  %v2337_v39 = vpop.f32.mrb[9].mxu0 }
 0x1c1   : > { %v2338_v19 = vadd.f32 %v4558_v52, %v2337_v39  ;;  %v3274_v61 = vpop.f32.mrb[10].mxu0 }
 0x1c2   : > { %v3216_v10 = vpack.c.bf16 %v2346_v49, %v2346_v49  ;;  %v2349_v54 = vadd.f32 %v3274_v61, %v4558_v52  ;;  %v2340_v44 = vpop.f32.mrb[11].mxu0  ;;  %v2672_v3 = vmul.f32 %v2346_v49, %v2346_v49  ;;  %v2612_v14 = vsel %vm2174_vm10, %v2346_v49, 0.0 }
 0x1c3   : > { %v3214_v46 = vpack.c.bf16 %v2338_v19, %v2338_v19  ;;  %v2608_v56 = vsel %vm2174_vm10, %v2338_v19, 0.0  ;;  %v2670_v23 = vmul.f32 %v2338_v19, %v2338_v19  ;;  %v2341_v60 = vadd.f32 %v4558_v52, %v2340_v44 }
 0x1c4   : > { %2571 = vst.msk [vmem:[%s4572_s20 + $0x28] sm:$0xf] %vm2560_vm12, %v3216_v10  ;;  %v2609_v55 = vadd.f32 %v2608_v56, %v2607_v45  ;;  %v3217_v31 = vpack.c.bf16 %v2349_v54, %v2349_v54  ;;  %v2673_v25 = vmul.f32 %v2349_v54, %v2349_v54  ;;  %v2614_v63 = vsel %vm2174_vm10, %v2349_v54, 0.0 }
 0x1c5   : > { %2569 = vst.msk [vmem:[%s4572_s20 + $0x20] sm:$0xf] %vm2560_vm12, %v3214_v46  ;;  %v2709_v20 = vsel %vm2174_vm10, %v2670_v23, 0.0  ;;  %v3215_v13 = vpack.c.bf16 %v2341_v60, %v2341_v60  ;;  %v2610_v32 = vsel %vm2174_vm10, %v2341_v60, 0.0  ;;  %v2671_v50 = vmul.f32 %v2341_v60, %v2341_v60 }
 0x1c6   : > { %v2710_v5 = vadd.f32 %v2709_v20, %v2708_v42  ;;  %2572 = vst.msk [vmem:[%s4572_s20 + $0x2c] sm:$0xf] %vm2560_vm12, %v3217_v31  ;;  %v2611_v6 = vadd.f32 %v2610_v32, %v2609_v55  ;;  %v2713_v59 = vsel %vm2174_vm10, %v2672_v3, 0.0  ;;  %v2715_v16 = vsel %vm2174_vm10, %v2673_v25, 0.0 }
 0x1c7   : > { %2570 = vst.msk [vmem:[%s4572_s20 + $0x24] sm:$0xf] %vm2560_vm12, %v3215_v13  ;;  %v2711_v27 = vsel %vm2174_vm10, %v2671_v50, 0.0 }
 0x1c8   : > { %v2613_v11 = vadd.f32 %v2612_v14, %v2611_v6  ;;  %v2712_v24 = vadd.f32 %v2711_v27, %v2710_v5 }
 0x1ca   : > { %v2615_v53 = vadd.f32 %v2614_v63, %v2613_v11  ;;  %v2714_v8 = vadd.f32 %v2713_v59, %v2712_v24 }
 0x1cc   : > { %v2716_v15 = vadd.f32 %v2715_v16, %v2714_v8 }
 0x1df   : > { %v3277_v29 = vpop.f32.mrb[12].mxu0 }
 0x1e0   : > { %v2362_v37 = vadd.f32 %v3277_v29, %v4558_v52  ;;  %v2353_v9 = vpop.f32.mrb[13].mxu0 }
 0x1e1   : > { %v2354_v51 = vadd.f32 %v4558_v52, %v2353_v9  ;;  %v3278_v35 = vpop.f32.mrb[14].mxu0 }
 0x1e2   : > { %v3220_v1 = vpack.c.bf16 %v2362_v37, %v2362_v37  ;;  %v2365_v30 = vadd.f32 %v3278_v35, %v4558_v52  ;;  %v2356_v57 = vpop.f32.mrb[15].mxu0  ;;  %v2676_v2 = vmul.f32 %v2362_v37, %v2362_v37  ;;  %v2620_v7 = vsel %vm2174_vm10, %v2362_v37, 0.0 }
 0x1e3   : > { %v3218_v58 = vpack.c.bf16 %v2354_v51, %v2354_v51  ;;  %v2616_v22 = vsel %vm2174_vm10, %v2354_v51, 0.0  ;;  %v2674_v12 = vmul.f32 %v2354_v51, %v2354_v51  ;;  %v2357_v0 = vadd.f32 %v4558_v52, %v2356_v57 }
 0x1e4   : > { %2575 = vst.msk [vmem:[%s4572_s20 + $0x38] sm:$0xf] %vm2560_vm12, %v3220_v1  ;;  %v2617_v48 = vadd.f32 %v2616_v22, %v2615_v53  ;;  %v3221_v18 = vpack.c.bf16 %v2365_v30, %v2365_v30  ;;  %v2677_v62 = vmul.f32 %v2365_v30, %v2365_v30  ;;  %v2622_v26 = vsel %vm2174_vm10, %v2365_v30, 0.0 }
 0x1e5   : > { %2573 = vst.msk [vmem:[%s4572_s20 + $0x30] sm:$0xf] %vm2560_vm12, %v3218_v58  ;;  %v2717_v41 = vsel %vm2174_vm10, %v2674_v12, 0.0  ;;  %v3219_v17 = vpack.c.bf16 %v2357_v0, %v2357_v0  ;;  %v2618_v43 = vsel %vm2174_vm10, %v2357_v0, 0.0  ;;  %v2675_v47 = vmul.f32 %v2357_v0, %v2357_v0 }
 0x1e6   : > { %v2718_v21 = vadd.f32 %v2717_v41, %v2716_v15  ;;  %2576 = vst.msk [vmem:[%s4572_s20 + $0x3c] sm:$0xf] %vm2560_vm12, %v3221_v18  ;;  %v2619_v40 = vadd.f32 %v2618_v43, %v2617_v48  ;;  %v2721_v45 = vsel %vm2174_vm10, %v2676_v2, 0.0  ;;  %v2723_v42 = vsel %vm2174_vm10, %v2677_v62, 0.0 }
 0x1e7   : > { %2574 = vst.msk [vmem:[%s4572_s20 + $0x34] sm:$0xf] %vm2560_vm12, %v3219_v17  ;;  %v2719_v28 = vsel %vm2174_vm10, %v2675_v47, 0.0 }
 0x1e8   : > { %v2621_v36 = vadd.f32 %v2620_v7, %v2619_v40  ;;  %v2720_v4 = vadd.f32 %v2719_v28, %v2718_v21 }
 0x1ea   : > { %v2623_v38 = vadd.f32 %v2622_v26, %v2621_v36  ;;  %v2722_v34 = vadd.f32 %v2721_v45, %v2720_v4 }
 0x1ec   : > { %v2724_v33 = vadd.f32 %v2723_v42, %v2722_v34 }
 0x1ff   : > { %v3281_v49 = vpop.f32.mrb[0].mxu1 }
 0x200   : > { %v2378_v39 = vadd.f32 %v3281_v49, %v4558_v52  ;;  %v2369_v19 = vpop.f32.mrb[1].mxu1 }
 0x201   : > { %v2370_v61 = vadd.f32 %v4558_v52, %v2369_v19  ;;  %v3282_v10 = vpop.f32.mrb[2].mxu1 }
 0x202   : > { %v3224_v54 = vpack.c.bf16 %v2378_v39, %v2378_v39  ;;  %v2381_v44 = vadd.f32 %v3282_v10, %v4558_v52  ;;  %v2372_v46 = vpop.f32.mrb[3].mxu1  ;;  %v2680_v5 = vmul.f32 %v2378_v39, %v2378_v39  ;;  %v2628_v25 = vsel %vm2174_vm10, %v2378_v39, 0.0 }
 0x203   : > { %v3222_v56 = vpack.c.bf16 %v2370_v61, %v2370_v61  ;;  %v2624_v23 = vsel %vm2174_vm10, %v2370_v61, 0.0  ;;  %v2678_v60 = vmul.f32 %v2370_v61, %v2370_v61  ;;  %v2373_v55 = vadd.f32 %v4558_v52, %v2372_v46 }
 0x204   : > { %2579 = vst.msk [vmem:[%s4572_s20 + $0x48] sm:$0xf] %vm2560_vm12, %v3224_v54  ;;  %v2625_v31 = vadd.f32 %v2624_v23, %v2623_v38  ;;  %v3225_v20 = vpack.c.bf16 %v2381_v44, %v2381_v44  ;;  %v2681_v11 = vmul.f32 %v2381_v44, %v2381_v44  ;;  %v2630_v24 = vsel %vm2174_vm10, %v2381_v44, 0.0 }
 0x205   : > { %2577 = vst.msk [vmem:[%s4572_s20 + $0x40] sm:$0xf] %vm2560_vm12, %v3222_v56  ;;  %v2725_v13 = vsel %vm2174_vm10, %v2678_v60, 0.0  ;;  %v3223_v32 = vpack.c.bf16 %v2373_v55, %v2373_v55  ;;  %v2626_v3 = vsel %vm2174_vm10, %v2373_v55, 0.0  ;;  %v2679_v14 = vmul.f32 %v2373_v55, %v2373_v55 }
 0x206   : > { %v2726_v6 = vadd.f32 %v2725_v13, %v2724_v33  ;;  %2580 = vst.msk [vmem:[%s4572_s20 + $0x4c] sm:$0xf] %vm2560_vm12, %v3225_v20  ;;  %v2627_v50 = vadd.f32 %v2626_v3, %v2625_v31  ;;  %v2729_v53 = vsel %vm2174_vm10, %v2680_v5, 0.0  ;;  %v2731_v15 = vsel %vm2174_vm10, %v2681_v11, 0.0 }
 0x207   : > { %2578 = vst.msk [vmem:[%s4572_s20 + $0x44] sm:$0xf] %vm2560_vm12, %v3223_v32  ;;  %v2727_v63 = vsel %vm2174_vm10, %v2679_v14, 0.0 }
 0x208   : > { %v2629_v27 = vadd.f32 %v2628_v25, %v2627_v50  ;;  %v2728_v59 = vadd.f32 %v2727_v63, %v2726_v6 }
 0x20a   : > { %v2631_v8 = vadd.f32 %v2630_v24, %v2629_v27  ;;  %v2730_v16 = vadd.f32 %v2729_v53, %v2728_v59 }
 0x20c   : > { %v2732_v29 = vadd.f32 %v2731_v15, %v2730_v16 }
 0x21f   : > { %v3285_v37 = vpop.f32.mrb[4].mxu1 }
 0x220   : > { %v2394_v9 = vadd.f32 %v3285_v37, %v4558_v52  ;;  %v2385_v51 = vpop.f32.mrb[5].mxu1 }
 0x221   : > { %v2386_v35 = vadd.f32 %v4558_v52, %v2385_v51  ;;  %v3286_v1 = vpop.f32.mrb[6].mxu1 }
 0x222   : > { %v3228_v30 = vpack.c.bf16 %v2394_v9, %v2394_v9  ;;  %v2397_v57 = vadd.f32 %v3286_v1, %v4558_v52  ;;  %v2388_v58 = vpop.f32.mrb[7].mxu1  ;;  %v2684_v21 = vmul.f32 %v2394_v9, %v2394_v9  ;;  %v2636_v62 = vsel %vm2174_vm10, %v2394_v9, 0.0 }
 0x223   : > { %v3226_v22 = vpack.c.bf16 %v2386_v35, %v2386_v35  ;;  %v2632_v12 = vsel %vm2174_vm10, %v2386_v35, 0.0  ;;  %v2682_v0 = vmul.f32 %v2386_v35, %v2386_v35  ;;  %v2389_v48 = vadd.f32 %v4558_v52, %v2388_v58 }
 0x224   : > { %2583 = vst.msk [vmem:[%s4572_s20 + $0x58] sm:$0xf] %vm2560_vm12, %v3228_v30  ;;  %v2633_v18 = vadd.f32 %v2632_v12, %v2631_v8  ;;  %v3229_v41 = vpack.c.bf16 %v2397_v57, %v2397_v57  ;;  %v2685_v36 = vmul.f32 %v2397_v57, %v2397_v57  ;;  %v2638_v4 = vsel %vm2174_vm10, %v2397_v57, 0.0 }
 0x225   : > { %2581 = vst.msk [vmem:[%s4572_s20 + $0x50] sm:$0xf] %vm2560_vm12, %v3226_v22  ;;  %v2733_v17 = vsel %vm2174_vm10, %v2682_v0, 0.0  ;;  %v3227_v43 = vpack.c.bf16 %v2389_v48, %v2389_v48  ;;  %v2634_v2 = vsel %vm2174_vm10, %v2389_v48, 0.0  ;;  %v2683_v7 = vmul.f32 %v2389_v48, %v2389_v48 }
 0x226   : > { %v2734_v40 = vadd.f32 %v2733_v17, %v2732_v29  ;;  %2584 = vst.msk [vmem:[%s4572_s20 + $0x5c] sm:$0xf] %vm2560_vm12, %v3229_v41  ;;  %v2635_v47 = vadd.f32 %v2634_v2, %v2633_v18  ;;  %v2737_v38 = vsel %vm2174_vm10, %v2684_v21, 0.0  ;;  %v2739_v33 = vsel %vm2174_vm10, %v2685_v36, 0.0 }
 0x227   : > { %2582 = vst.msk [vmem:[%s4572_s20 + $0x54] sm:$0xf] %vm2560_vm12, %v3227_v43  ;;  %v2735_v26 = vsel %vm2174_vm10, %v2683_v7, 0.0 }
 0x228   : > { %v2637_v28 = vadd.f32 %v2636_v62, %v2635_v47  ;;  %v2736_v45 = vadd.f32 %v2735_v26, %v2734_v40 }
 0x22a   : > { %v2639_v34 = vadd.f32 %v2638_v4, %v2637_v28  ;;  %v2738_v42 = vadd.f32 %v2737_v38, %v2736_v45 }
 0x22c   : > { %v2740_v49 = vadd.f32 %v2739_v33, %v2738_v42 }
 0x23f   : > { %v3289_v39 = vpop.f32.mrb[8].mxu1 }
 0x240   : > { %v2410_v19 = vadd.f32 %v3289_v39, %v4558_v52  ;;  %v2401_v61 = vpop.f32.mrb[9].mxu1 }
 0x241   : > { %v2402_v10 = vadd.f32 %v4558_v52, %v2401_v61  ;;  %v3290_v54 = vpop.f32.mrb[10].mxu1 }
 0x242   : > { %v3232_v44 = vpack.c.bf16 %v2410_v19, %v2410_v19  ;;  %v2413_v46 = vadd.f32 %v3290_v54, %v4558_v52  ;;  %v2404_v56 = vpop.f32.mrb[11].mxu1  ;;  %v2688_v6 = vmul.f32 %v2410_v19, %v2410_v19  ;;  %v2644_v11 = vsel %vm2174_vm10, %v2410_v19, 0.0 }
 0x243   : > { %v3230_v23 = vpack.c.bf16 %v2402_v10, %v2402_v10  ;;  %v2640_v60 = vsel %vm2174_vm10, %v2402_v10, 0.0  ;;  %v2686_v55 = vmul.f32 %v2402_v10, %v2402_v10  ;;  %v2405_v31 = vadd.f32 %v4558_v52, %v2404_v56 }
 0x244   : > { %2587 = vst.msk [vmem:[%s4572_s20 + $0x68] sm:$0xf] %vm2560_vm12, %v3232_v44  ;;  %v2641_v20 = vadd.f32 %v2640_v60, %v2639_v34  ;;  %v3233_v13 = vpack.c.bf16 %v2413_v46, %v2413_v46  ;;  %v2689_v27 = vmul.f32 %v2413_v46, %v2413_v46  ;;  %v2646_v59 = vsel %vm2174_vm10, %v2413_v46, 0.0 }
 0x245   : > { %2585 = vst.msk [vmem:[%s4572_s20 + $0x60] sm:$0xf] %vm2560_vm12, %v3230_v23  ;;  %v2741_v32 = vsel %vm2174_vm10, %v2686_v55, 0.0  ;;  %v3231_v3 = vpack.c.bf16 %v2405_v31, %v2405_v31  ;;  %v2642_v5 = vsel %vm2174_vm10, %v2405_v31, 0.0  ;;  %v2687_v25 = vmul.f32 %v2405_v31, %v2405_v31 }
 0x246   : > { %v2742_v50 = vadd.f32 %v2741_v32, %v2740_v49  ;;  %2588 = vst.msk [vmem:[%s4572_s20 + $0x6c] sm:$0xf] %vm2560_vm12, %v3233_v13  ;;  %v2643_v14 = vadd.f32 %v2642_v5, %v2641_v20  ;;  %v2745_v8 = vsel %vm2174_vm10, %v2688_v6, 0.0  ;;  %v2747_v29 = vsel %vm2174_vm10, %v2689_v27, 0.0 }
 0x247   : > { %2586 = vst.msk [vmem:[%s4572_s20 + $0x64] sm:$0xf] %vm2560_vm12, %v3231_v3  ;;  %v2743_v24 = vsel %vm2174_vm10, %v2687_v25, 0.0 }
 0x248   : > { %v2645_v63 = vadd.f32 %v2644_v11, %v2643_v14  ;;  %v2744_v53 = vadd.f32 %v2743_v24, %v2742_v50 }
 0x24a   : > { %v2647_v16 = vadd.f32 %v2646_v59, %v2645_v63  ;;  %v2746_v15 = vadd.f32 %v2745_v8, %v2744_v53 }
 0x24c   : > { %v2748_v37 = vadd.f32 %v2747_v29, %v2746_v15 }
 0x25c   : > { %v3293_v9 = vpop.f32.mrb[12].mxu1 }
 0x25d   : > { %v2426_v51 = vadd.f32 %v3293_v9, %v4558_v52  ;;  %v2417_v35 = vpop.f32.mrb[13].mxu1 }
 0x25e   : > { %v2418_v1 = vadd.f32 %v4558_v52, %v2417_v35  ;;  %v3294_v30 = vpop.f32.mrb[14].mxu1 }
 0x25f   : > { %v3236_v57 = vpack.c.bf16 %v2426_v51, %v2426_v51  ;;  %v2429_v58 = vadd.f32 %v3294_v30, %v4558_v52  ;;  %v2420_v22 = vpop.f32.mrb[15].mxu1  ;;  %v2692_v40 = vmul.f32 %v2426_v51, %v2426_v51  ;;  %v2652_v36 = vsel %vm2174_vm10, %v2426_v51, 0.0 }
 0x260   : > { %v3234_v12 = vpack.c.bf16 %v2418_v1, %v2418_v1  ;;  %v2648_v0 = vsel %vm2174_vm10, %v2418_v1, 0.0  ;;  %v2690_v48 = vmul.f32 %v2418_v1, %v2418_v1  ;;  %v2421_v18 = vadd.f32 %v4558_v52, %v2420_v22 }
 0x261   : > { %2591 = vst.msk [vmem:[%s4572_s20 + $0x78] sm:$0xf] %vm2560_vm12, %v3236_v57  ;;  %v2649_v41 = vadd.f32 %v2648_v0, %v2647_v16  ;;  %v3237_v17 = vpack.c.bf16 %v2429_v58, %v2429_v58  ;;  %v2693_v52 = vmul.f32 %v2429_v58, %v2429_v58  ;;  %v2654_v4 = vsel %vm2174_vm10, %v2429_v58, 0.0 }
 0x262   : > { %2589 = vst.msk [vmem:[%s4572_s20 + $0x70] sm:$0xf] %vm2560_vm12, %v3234_v12  ;;  %v2749_v43 = vsel %vm2174_vm10, %v2690_v48, 0.0  ;;  %v3235_v2 = vpack.c.bf16 %v2421_v18, %v2421_v18  ;;  %v2650_v21 = vsel %vm2174_vm10, %v2421_v18, 0.0  ;;  %v2691_v62 = vmul.f32 %v2421_v18, %v2421_v18 }
 0x263   : > { %v2750_v47 = vadd.f32 %v2749_v43, %v2748_v37  ;;  %2592 = vst.msk [vmem:[%s4572_s20 + $0x7c] sm:$0xf] %vm2560_vm12, %v3237_v17  ;;  %v2651_v7 = vadd.f32 %v2650_v21, %v2649_v41  ;;  %v2753_v38 = vsel %vm2174_vm10, %v2692_v40, 0.0  ;;  %v2755_v33 = vsel %vm2174_vm10, %v2693_v52, 0.0 }
 0x264   : > { %2590 = vst.msk [vmem:[%s4572_s20 + $0x74] sm:$0xf] %vm2560_vm12, %v3235_v2  ;;  %v2751_v26 = vsel %vm2174_vm10, %v2691_v62, 0.0 }
 0x265   : > { %v2653_v28 = vadd.f32 %v2652_v36, %v2651_v7  ;;  %v2752_v45 = vadd.f32 %v2751_v26, %v2750_v47 }
 0x267   : > { %v2655_v34 = vadd.f32 %v2654_v4, %v2653_v28  ;;  %v2754_v42 = vadd.f32 %v2753_v38, %v2752_v45 }
 0x269   : > { %v2656_v49 = vrot.slane %v2655_v34, 4  ;;  %v2756_v39 = vadd.f32 %v2755_v33, %v2754_v42 }
 0x26b   : > { %v2657_v19 = vadd.f32 %v2656_v49, %v2655_v34  ;;  %v2757_v61 = vrot.slane %v2756_v39, 4 }
 0x26d   : > { %v2658_v10 = vrot.slane %v2657_v19, 2  ;;  %v2758_v54 = vadd.f32 %v2757_v61, %v2756_v39 }
 0x26f   : > { %v2659_v44 = vadd.f32 %v2658_v10, %v2657_v19  ;;  %v2759_v46 = vrot.slane %v2758_v54, 2 }
 0x271   : > { %v2660_v56 = vrot.slane %v2659_v44, 1  ;;  %v2760_v23 = vadd.f32 %v2759_v46, %v2758_v54 }
 0x273   : > { %v2661_v60 = vadd.f32 %v2660_v56, %v2659_v44  ;;  %v2761_v55 = vrot.slane %v2760_v23, 1 }
 0x275   : > { %2764 = vst.msk [vmem:[%s238_s23] sm:$0x1] %vm2763_vm13, %v2661_v60  ;;  %v2762_v31 = vadd.f32 %v2761_v55, %v2760_v23 }
 0x277   : > { %2765 = vst.msk [vmem:[%s241_s26] sm:$0x1] %vm2763_vm13, %v2762_v31 }
 0x278 PF: > { %s16_s18 = sadd.s32 1, %s3473_s18  }
 0x279   : > { %p13_p4 = scmp.ge.s32.totalorder %s16_s18, 4  }
 0x27b   :  { %15 = sbr.rel (!%p13_p4) target bundleno = 1 (0x1), region = 88 }

</bundles_post_ra>
